<compile_context>
chip_gen: v6e
topology: v6e:2x2x1
jax: 0.10.0
libtpu: 0.0.40
codegen_flags: <defaults>
</compile_context>

<pallas_src>
import functools

import jax
import jax.numpy as jnp
import numpy as np
from jax import lax
from jax.experimental import pallas as pl
from jax.experimental.pallas import tpu as pltpu

# Model dims (from the PyTorch module defaults)
VOCAB = 150
EMB = 128
HID = 128
OUT = 2


def _make_gru_chunk_kernel(Tc, T_actual, T_pad):
    """Kernel processing Tc GRU steps per grid iteration.

    gi_ref   : (Tc, B_pad, 3*HID)  precomputed x_t @ W_ih^T + b_ih (+ b_hh[r,z])
    h0_ref   : (B_pad, HID)        initial hidden state
    whh_ref  : (HID, 3*HID)        W_hh^T
    bhn_ref  : (1, HID)            b_hn (the only hidden bias that can't be folded)
    hseq_ref : (Tc, B_pad, HID)    per-step hidden states (lane-dense output)
    hfin_ref : (B_pad, HID)        carried / final hidden state (constant block)
    """
    needs_mask = (T_pad != T_actual)

    def kernel(gi_ref, h0_ref, whh_ref, bhn_ref, hseq_ref, hfin_ref):
        c = pl.program_id(0)

        @pl.when(c == 0)
        def _():
            hfin_ref[...] = h0_ref[...]

        whh = whh_ref[...]                                     # (HID, 3*HID)
        bhn = bhn_ref[...]                                     # (1, HID)
        base = c * Tc

        def step(i, h_prev):
            gi_t = gi_ref[i]                                   # (B_pad, 3*HID)
            gh = jnp.dot(h_prev, whh,
                         preferred_element_type=jnp.float32)   # (B_pad, 3*HID)
            r = jax.nn.sigmoid(gi_t[:, :HID] + gh[:, :HID])
            z = jax.nn.sigmoid(gi_t[:, HID:2 * HID] + gh[:, HID:2 * HID])
            n = jnp.tanh(gi_t[:, 2 * HID:] + r * (gh[:, 2 * HID:] + bhn))
            h_new = n + z * (h_prev - n)
            if needs_mask:
                # Freeze the recurrence past the true sequence end (time pad).
                h_new = jnp.where(base + i < T_actual, h_new, h_prev)
            hseq_ref[i] = h_new
            return h_new

        h_last = lax.fori_loop(0, Tc, step, hfin_ref[...], unroll=True)
        hfin_ref[...] = h_last

    return kernel


def rnn_forward(x_ids, params, h=None, time_chunk=32):
    """Mirrors RNN.forward: embedding -> GRU -> linear. Returns (y, h)."""
    emb_table = params["embedding"]
    w_ih, w_hh = params["w_ih"], params["w_hh"]
    b_ih, b_hh = params["b_ih"], params["b_hh"]
    w_lin, b_lin = params["w_lin"], params["b_lin"]

    B, T = x_ids.shape
    B_pad = ((B + 7) // 8) * 8                   # f32 sublane multiple
    Tc = max(1, min(time_chunk, T))
    T_pad = pl.cdiv(T, Tc) * Tc

    # --- Embedding (plain JAX gather), built directly time-major: (T, B, EMB)
    x_tm = jnp.take(emb_table, x_ids.T, axis=0).astype(jnp.float32)

    # --- Hoisted input-gate GEMM (no h dependence): one big matmul, (T, B, 3H)
    #     Fold the r/z hidden biases in here too (they are additive, h-free).
    b_comb = b_ih + jnp.concatenate(
        [b_hh[:2 * HID], jnp.zeros((HID,), b_hh.dtype)])
    gi = jnp.dot(x_tm, w_ih.T) + b_comb
    gi = jnp.pad(gi, ((0, T_pad - T), (0, B_pad - B), (0, 0)))

    # --- Initial hidden state, padded to (B_pad, HID)
    if h is None:
        h0 = jnp.zeros((B_pad, HID), jnp.float32)
    else:
        h0 = jnp.pad(h.reshape(B, HID).astype(jnp.float32),
                     ((0, B_pad - B), (0, 0)))

    whh_t = w_hh.T                                # (HID, 3*HID)
    bhn = b_hh[2 * HID:].reshape(1, HID)          # (1, HID)

    kernel = _make_gru_chunk_kernel(Tc, T, T_pad)

    hseq, hfin = pl.pallas_call(
        kernel,
        out_shape=(
            jax.ShapeDtypeStruct((T_pad, B_pad, HID), jnp.float32),
            jax.ShapeDtypeStruct((B_pad, HID), jnp.float32),
        ),
        grid_spec=pltpu.PrefetchScalarGridSpec(
            num_scalar_prefetch=0,
            grid=(T_pad // Tc,),
            in_specs=[
                pl.BlockSpec((Tc, B_pad, 3 * HID), lambda c: (c, 0, 0)),  # gi
                pl.BlockSpec((B_pad, HID), lambda c: (0, 0)),             # h0
                pl.BlockSpec((HID, 3 * HID), lambda c: (0, 0)),           # W_hh^T
                pl.BlockSpec((1, HID), lambda c: (0, 0)),                 # b_hn
            ],
            out_specs=[
                pl.BlockSpec((Tc, B_pad, HID), lambda c: (c, 0, 0)),      # h seq
                pl.BlockSpec((B_pad, HID), lambda c: (0, 0)),             # final h
            ],
        ),
        compiler_params=pltpu.CompilerParams(
            dimension_semantics=("arbitrary",)),   # recurrence: sequential
    )(gi, h0, whh_t, bhn)

    # --- Hoisted output projection: one big (T*B, 128) @ (128, 2) matmul
    h_seq = hseq[:T, :B, :]                                  # (T, B, HID)
    y_tm = jnp.dot(h_seq, w_lin.T) + b_lin                   # (T, B, OUT)
    y = jnp.transpose(y_tm, (1, 0, 2))                       # (B, T, OUT)
    h_out = hfin[:B, :][None, :, :]                          # (1, B, HID)
    return y, h_out


def make_params(key):
    ks = jax.random.split(key, 7)
    scale = 0.1
    return {
        "embedding": scale * jax.random.normal(ks[0], (VOCAB, EMB), jnp.float32),
        "w_ih": scale * jax.random.normal(ks[1], (3 * HID, EMB), jnp.float32),
        "w_hh": scale * jax.random.normal(ks[2], (3 * HID, HID), jnp.float32),
        "b_ih": scale * jax.random.normal(ks[3], (3 * HID,), jnp.float32),
        "b_hh": scale * jax.random.normal(ks[4], (3 * HID,), jnp.float32),
        "w_lin": scale * jax.random.normal(ks[5], (OUT, HID), jnp.float32),
        "b_lin": scale * jax.random.normal(ks[6], (OUT,), jnp.float32),
    }


def rnn_forward_ref(x_ids, params, h=None):
    """Pure-JAX reference of the same PyTorch semantics, for checking."""
    B, T = x_ids.shape
    x_emb = jnp.take(params["embedding"], x_ids, axis=0)
    h_t = jnp.zeros((B, HID), jnp.float32) if h is None else h.reshape(B, HID)
    w_ih, w_hh = params["w_ih"], params["w_hh"]
    b_ih, b_hh = params["b_ih"], params["b_hh"]
    outs = []
    for t in range(T):
        x_t = x_emb[:, t, :]
        gi = x_t @ w_ih.T + b_ih
        gh = h_t @ w_hh.T + b_hh
        r = jax.nn.sigmoid(gi[:, :HID] + gh[:, :HID])
        z = jax.nn.sigmoid(gi[:, HID:2 * HID] + gh[:, HID:2 * HID])
        n = jnp.tanh(gi[:, 2 * HID:] + r * gh[:, 2 * HID:])
        h_t = (1.0 - z) * n + z * h_t
        outs.append(h_t)
    out = jnp.stack(outs, axis=1)                 # (B, T, HID)
    y = out @ params["w_lin"].T + params["b_lin"]
    return y, h_t[None, :, :]


if __name__ == "__main__":
    key = jax.random.PRNGKey(0)
    pkey, xkey = jax.random.split(key)
    params = make_params(pkey)

    B, T = 2, 8
    x_ids = jax.random.randint(xkey, (B, T), 0, VOCAB, dtype=jnp.int32)

    fwd = jax.jit(functools.partial(rnn_forward, time_chunk=32))
    y, h = fwd(x_ids, params)
    y = jax.block_until_ready(y)
    h = jax.block_until_ready(h)

    y_ref, h_ref = rnn_forward_ref(x_ids, params, h=None)
    assert y.shape == (B, T, OUT) and h.shape == (1, B, HID)
    np.testing.assert_allclose(np.asarray(y), np.asarray(y_ref), rtol=1e-4, atol=1e-4)
    np.testing.assert_allclose(np.asarray(h), np.asarray(h_ref), rtol=1e-4, atol=1e-4)

    # Also exercise an explicit initial hidden state and a T that needs padding.
    h_init = 0.05 * jax.random.normal(jax.random.PRNGKey(3), (1, B, HID), jnp.float32)
    T2 = 11
    x_ids2 = jax.random.randint(jax.random.PRNGKey(4), (B, T2), 0, VOCAB, dtype=jnp.int32)
    y2, h2 = rnn_forward(x_ids2, params, h=h_init, time_chunk=4)
    y2 = jax.block_until_ready(y2)
    y2_ref, h2_ref = rnn_forward_ref(x_ids2, params, h=h_init)
    np.testing.assert_allclose(np.asarray(y2), np.asarray(y2_ref), rtol=1e-4, atol=1e-4)
    np.testing.assert_allclose(np.asarray(h2), np.asarray(h2_ref), rtol=1e-4, atol=1e-4)

    # TODO(synk): nn.Dropout(0.3) is defined but never applied in the PyTorch
    # forward(), so no dropout is implemented here (matches the spec exactly).
    print("KERNEL_OK")
</pallas_src>

<mosaic_0001>
module attributes {stable_mosaic.version = 11 : i64} {
  func.func @kernel(%arg0: i32, %arg1: memref<8x8x384xf32, #tpu.memory_space<vmem>>, %arg2: memref<8x128xf32, #tpu.memory_space<vmem>>, %arg3: memref<128x384xf32, #tpu.memory_space<vmem>>, %arg4: memref<1x128xf32, #tpu.memory_space<vmem>>, %arg5: memref<8x8x128xf32, #tpu.memory_space<vmem>>, %arg6: memref<8x128xf32, #tpu.memory_space<vmem>>) attributes {dimension_semantics = [#tpu.dimension_semantics<arbitrary>], iteration_bounds = array<i64: 1>, scalar_prefetch = 0 : i64, scratch_operands = 0 : i64, tpu.core_type = #tpu.core_type<tc>, window_params = [{transform_indices = @transform_0, window_bounds = array<i64: 8, 8, 384>}, {pipeline_mode = #tpu.pipeline_mode<synchronous>, transform_indices = @transform_1, window_bounds = array<i64: 8, 128>}, {pipeline_mode = #tpu.pipeline_mode<synchronous>, transform_indices = @transform_2, window_bounds = array<i64: 128, 384>}, {pipeline_mode = #tpu.pipeline_mode<synchronous>, transform_indices = @transform_3, window_bounds = array<i64: 1, 128>}, {transform_indices = @transform_4, window_bounds = array<i64: 8, 8, 128>}, {pipeline_mode = #tpu.pipeline_mode<synchronous>, transform_indices = @transform_5, window_bounds = array<i64: 8, 128>}]} {
    %c0_i32 = arith.constant 0 : i32
    %0 = arith.cmpi eq, %arg0, %c0_i32 : i32
    %1 = arith.extui %0 : i1 to i32
    %c0_i32_0 = arith.constant 0 : i32
    %2 = arith.cmpi ne, %1, %c0_i32_0 : i32
    scf.if %2 {
      %c0_64 = arith.constant 0 : index
      %c0_65 = arith.constant 0 : index
      %279 = vector.load %arg2[%c0_64, %c0_65] : memref<8x128xf32, #tpu.memory_space<vmem>>, vector<8x128xf32>
      %c0_66 = arith.constant 0 : index
      %c0_67 = arith.constant 0 : index
      %280 = vector.load %arg6[%c0_66, %c0_67] : memref<8x128xf32, #tpu.memory_space<vmem>>, vector<8x128xf32>
      tpu.vector_store %arg6[%c0_66, %c0_67], %279 {strides = array<i32>} : memref<8x128xf32, #tpu.memory_space<vmem>>, vector<8x128xf32>,
    } else {
    }
    %c0 = arith.constant 0 : index
    %c0_1 = arith.constant 0 : index
    %3 = vector.load %arg3[%c0, %c0_1] : memref<128x384xf32, #tpu.memory_space<vmem>>, vector<128x384xf32>
    %c0_2 = arith.constant 0 : index
    %c0_3 = arith.constant 0 : index
    %4 = vector.load %arg4[%c0_2, %c0_3] : memref<1x128xf32, #tpu.memory_space<vmem>>, vector<1x128xf32>
    %c0_4 = arith.constant 0 : index
    %c0_5 = arith.constant 0 : index
    %5 = vector.load %arg6[%c0_4, %c0_5] : memref<8x128xf32, #tpu.memory_space<vmem>>, vector<8x128xf32>
    %c0_i32_6 = arith.constant 0 : i32
    %6 = arith.index_cast %c0_i32_6 : i32 to index
    %c0_7 = arith.constant 0 : index
    %c0_8 = arith.constant 0 : index
    %7 = vector.load %arg1[%6, %c0_7, %c0_8] : memref<8x8x384xf32, #tpu.memory_space<vmem>>, vector<1x8x384xf32>
    %8 = vector.shape_cast %7 : vector<1x8x384xf32> to vector<8x384xf32>
    %cst = arith.constant dense<0.000000e+00> : vector<8x384xf32>
    %9 = tpu.matmul %5, %3, %cst {dimension_numbers = #tpu.dot_dimension_numbers<[1], [0], [0], [1], [0, 0, 1, 1], [], []>} : vector<8x128xf32>, vector<128x384xf32>, vector<8x384xf32> -> vector<8x384xf32>
    %10 = vector.extract_strided_slice %8 {offsets = [0, 0], sizes = [8, 128], strides = [1, 1]} : vector<8x384xf32> to vector<8x128xf32>
    %11 = vector.extract_strided_slice %9 {offsets = [0, 0], sizes = [8, 128], strides = [1, 1]} : vector<8x384xf32> to vector<8x128xf32>
    %12 = arith.addf %10, %11 : vector<8x128xf32>
    %13 = arith.negf %12 : vector<8x128xf32>
    %14 = math.exp %13 : vector<8x128xf32>
    %cst_9 = arith.constant 1.000000e+00 : f32
    %15 = vector.broadcast %cst_9 : f32 to vector<8x128xf32>
    %16 = arith.addf %15, %14 : vector<8x128xf32>
    %17 = arith.divf %15, %16 : vector<8x128xf32>
    %18 = vector.extract_strided_slice %8 {offsets = [0, 128], sizes = [8, 128], strides = [1, 1]} : vector<8x384xf32> to vector<8x128xf32>
    %19 = vector.extract_strided_slice %9 {offsets = [0, 128], sizes = [8, 128], strides = [1, 1]} : vector<8x384xf32> to vector<8x128xf32>
    %20 = arith.addf %18, %19 : vector<8x128xf32>
    %21 = arith.negf %20 : vector<8x128xf32>
    %22 = math.exp %21 : vector<8x128xf32>
    %cst_10 = arith.constant 1.000000e+00 : f32
    %23 = vector.broadcast %cst_10 : f32 to vector<8x128xf32>
    %24 = arith.addf %23, %22 : vector<8x128xf32>
    %25 = arith.divf %23, %24 : vector<8x128xf32>
    %26 = vector.extract_strided_slice %8 {offsets = [0, 256], sizes = [8, 128], strides = [1, 1]} : vector<8x384xf32> to vector<8x128xf32>
    %27 = vector.extract_strided_slice %9 {offsets = [0, 256], sizes = [8, 128], strides = [1, 1]} : vector<8x384xf32> to vector<8x128xf32>
    %28 = vector.broadcast %4 : vector<1x128xf32> to vector<8x128xf32>
    %29 = arith.addf %27, %28 : vector<8x128xf32>
    %30 = arith.mulf %17, %29 : vector<8x128xf32>
    %31 = arith.addf %26, %30 : vector<8x128xf32>
    %32 = math.tanh %31 : vector<8x128xf32>
    %33 = arith.subf %5, %32 : vector<8x128xf32>
    %34 = arith.mulf %25, %33 : vector<8x128xf32>
    %35 = arith.addf %32, %34 : vector<8x128xf32>
    %36 = arith.index_cast %c0_i32_6 : i32 to index
    %c0_11 = arith.constant 0 : index
    %c0_12 = arith.constant 0 : index
    %37 = vector.load %arg5[%36, %c0_11, %c0_12] : memref<8x8x128xf32, #tpu.memory_space<vmem>>, vector<1x8x128xf32>
    %38 = vector.shape_cast %37 : vector<1x8x128xf32> to vector<8x128xf32>
    %39 = vector.shape_cast %35 : vector<8x128xf32> to vector<1x8x128xf32>
    tpu.vector_store %arg5[%36, %c0_11, %c0_12], %39 {strides = array<i32>} : memref<8x8x128xf32, #tpu.memory_space<vmem>>, vector<1x8x128xf32>,
    %c1_i32 = arith.constant 1 : i32
    %40 = arith.index_cast %c1_i32 : i32 to index
    %c0_13 = arith.constant 0 : index
    %c0_14 = arith.constant 0 : index
    %41 = vector.load %arg1[%40, %c0_13, %c0_14] : memref<8x8x384xf32, #tpu.memory_space<vmem>>, vector<1x8x384xf32>
    %42 = vector.shape_cast %41 : vector<1x8x384xf32> to vector<8x384xf32>
    %cst_15 = arith.constant dense<0.000000e+00> : vector<8x384xf32>
    %43 = tpu.matmul %35, %3, %cst_15 {dimension_numbers = #tpu.dot_dimension_numbers<[1], [0], [0], [1], [0, 0, 1, 1], [], []>} : vector<8x128xf32>, vector<128x384xf32>, vector<8x384xf32> -> vector<8x384xf32>
    %44 = vector.extract_strided_slice %42 {offsets = [0, 0], sizes = [8, 128], strides = [1, 1]} : vector<8x384xf32> to vector<8x128xf32>
    %45 = vector.extract_strided_slice %43 {offsets = [0, 0], sizes = [8, 128], strides = [1, 1]} : vector<8x384xf32> to vector<8x128xf32>
    %46 = arith.addf %44, %45 : vector<8x128xf32>
    %47 = arith.negf %46 : vector<8x128xf32>
    %48 = math.exp %47 : vector<8x128xf32>
    %cst_16 = arith.constant 1.000000e+00 : f32
    %49 = vector.broadcast %cst_16 : f32 to vector<8x128xf32>
    %50 = arith.addf %49, %48 : vector<8x128xf32>
    %51 = arith.divf %49, %50 : vector<8x128xf32>
    %52 = vector.extract_strided_slice %42 {offsets = [0, 128], sizes = [8, 128], strides = [1, 1]} : vector<8x384xf32> to vector<8x128xf32>
    %53 = vector.extract_strided_slice %43 {offsets = [0, 128], sizes = [8, 128], strides = [1, 1]} : vector<8x384xf32> to vector<8x128xf32>
    %54 = arith.addf %52, %53 : vector<8x128xf32>
    %55 = arith.negf %54 : vector<8x128xf32>
    %56 = math.exp %55 : vector<8x128xf32>
    %cst_17 = arith.constant 1.000000e+00 : f32
    %57 = vector.broadcast %cst_17 : f32 to vector<8x128xf32>
    %58 = arith.addf %57, %56 : vector<8x128xf32>
    %59 = arith.divf %57, %58 : vector<8x128xf32>
    %60 = vector.extract_strided_slice %42 {offsets = [0, 256], sizes = [8, 128], strides = [1, 1]} : vector<8x384xf32> to vector<8x128xf32>
    %61 = vector.extract_strided_slice %43 {offsets = [0, 256], sizes = [8, 128], strides = [1, 1]} : vector<8x384xf32> to vector<8x128xf32>
    %62 = vector.broadcast %4 : vector<1x128xf32> to vector<8x128xf32>
    %63 = arith.addf %61, %62 : vector<8x128xf32>
    %64 = arith.mulf %51, %63 : vector<8x128xf32>
    %65 = arith.addf %60, %64 : vector<8x128xf32>
    %66 = math.tanh %65 : vector<8x128xf32>
    %67 = arith.subf %35, %66 : vector<8x128xf32>
    %68 = arith.mulf %59, %67 : vector<8x128xf32>
    %69 = arith.addf %66, %68 : vector<8x128xf32>
    %70 = arith.index_cast %c1_i32 : i32 to index
    %c0_18 = arith.constant 0 : index
    %c0_19 = arith.constant 0 : index
    %71 = vector.load %arg5[%70, %c0_18, %c0_19] : memref<8x8x128xf32, #tpu.memory_space<vmem>>, vector<1x8x128xf32>
    %72 = vector.shape_cast %71 : vector<1x8x128xf32> to vector<8x128xf32>
    %73 = vector.shape_cast %69 : vector<8x128xf32> to vector<1x8x128xf32>
    tpu.vector_store %arg5[%70, %c0_18, %c0_19], %73 {strides = array<i32>} : memref<8x8x128xf32, #tpu.memory_space<vmem>>, vector<1x8x128xf32>,
    %c2_i32 = arith.constant 2 : i32
    %74 = arith.index_cast %c2_i32 : i32 to index
    %c0_20 = arith.constant 0 : index
    %c0_21 = arith.constant 0 : index
    %75 = vector.load %arg1[%74, %c0_20, %c0_21] : memref<8x8x384xf32, #tpu.memory_space<vmem>>, vector<1x8x384xf32>
    %76 = vector.shape_cast %75 : vector<1x8x384xf32> to vector<8x384xf32>
    %cst_22 = arith.constant dense<0.000000e+00> : vector<8x384xf32>
    %77 = tpu.matmul %69, %3, %cst_22 {dimension_numbers = #tpu.dot_dimension_numbers<[1], [0], [0], [1], [0, 0, 1, 1], [], []>} : vector<8x128xf32>, vector<128x384xf32>, vector<8x384xf32> -> vector<8x384xf32>
    %78 = vector.extract_strided_slice %76 {offsets = [0, 0], sizes = [8, 128], strides = [1, 1]} : vector<8x384xf32> to vector<8x128xf32>
    %79 = vector.extract_strided_slice %77 {offsets = [0, 0], sizes = [8, 128], strides = [1, 1]} : vector<8x384xf32> to vector<8x128xf32>
    %80 = arith.addf %78, %79 : vector<8x128xf32>
    %81 = arith.negf %80 : vector<8x128xf32>
    %82 = math.exp %81 : vector<8x128xf32>
    %cst_23 = arith.constant 1.000000e+00 : f32
    %83 = vector.broadcast %cst_23 : f32 to vector<8x128xf32>
    %84 = arith.addf %83, %82 : vector<8x128xf32>
    %85 = arith.divf %83, %84 : vector<8x128xf32>
    %86 = vector.extract_strided_slice %76 {offsets = [0, 128], sizes = [8, 128], strides = [1, 1]} : vector<8x384xf32> to vector<8x128xf32>
    %87 = vector.extract_strided_slice %77 {offsets = [0, 128], sizes = [8, 128], strides = [1, 1]} : vector<8x384xf32> to vector<8x128xf32>
    %88 = arith.addf %86, %87 : vector<8x128xf32>
    %89 = arith.negf %88 : vector<8x128xf32>
    %90 = math.exp %89 : vector<8x128xf32>
    %cst_24 = arith.constant 1.000000e+00 : f32
    %91 = vector.broadcast %cst_24 : f32 to vector<8x128xf32>
    %92 = arith.addf %91, %90 : vector<8x128xf32>
    %93 = arith.divf %91, %92 : vector<8x128xf32>
    %94 = vector.extract_strided_slice %76 {offsets = [0, 256], sizes = [8, 128], strides = [1, 1]} : vector<8x384xf32> to vector<8x128xf32>
    %95 = vector.extract_strided_slice %77 {offsets = [0, 256], sizes = [8, 128], strides = [1, 1]} : vector<8x384xf32> to vector<8x128xf32>
    %96 = vector.broadcast %4 : vector<1x128xf32> to vector<8x128xf32>
    %97 = arith.addf %95, %96 : vector<8x128xf32>
    %98 = arith.mulf %85, %97 : vector<8x128xf32>
    %99 = arith.addf %94, %98 : vector<8x128xf32>
    %100 = math.tanh %99 : vector<8x128xf32>
    %101 = arith.subf %69, %100 : vector<8x128xf32>
    %102 = arith.mulf %93, %101 : vector<8x128xf32>
    %103 = arith.addf %100, %102 : vector<8x128xf32>
    %104 = arith.index_cast %c2_i32 : i32 to index
    %c0_25 = arith.constant 0 : index
    %c0_26 = arith.constant 0 : index
    %105 = vector.load %arg5[%104, %c0_25, %c0_26] : memref<8x8x128xf32, #tpu.memory_space<vmem>>, vector<1x8x128xf32>
    %106 = vector.shape_cast %105 : vector<1x8x128xf32> to vector<8x128xf32>
    %107 = vector.shape_cast %103 : vector<8x128xf32> to vector<1x8x128xf32>
    tpu.vector_store %arg5[%104, %c0_25, %c0_26], %107 {strides = array<i32>} : memref<8x8x128xf32, #tpu.memory_space<vmem>>, vector<1x8x128xf32>,
    %c3_i32 = arith.constant 3 : i32
    %108 = arith.index_cast %c3_i32 : i32 to index
    %c0_27 = arith.constant 0 : index
    %c0_28 = arith.constant 0 : index
    %109 = vector.load %arg1[%108, %c0_27, %c0_28] : memref<8x8x384xf32, #tpu.memory_space<vmem>>, vector<1x8x384xf32>
    %110 = vector.shape_cast %109 : vector<1x8x384xf32> to vector<8x384xf32>
    %cst_29 = arith.constant dense<0.000000e+00> : vector<8x384xf32>
    %111 = tpu.matmul %103, %3, %cst_29 {dimension_numbers = #tpu.dot_dimension_numbers<[1], [0], [0], [1], [0, 0, 1, 1], [], []>} : vector<8x128xf32>, vector<128x384xf32>, vector<8x384xf32> -> vector<8x384xf32>
    %112 = vector.extract_strided_slice %110 {offsets = [0, 0], sizes = [8, 128], strides = [1, 1]} : vector<8x384xf32> to vector<8x128xf32>
    %113 = vector.extract_strided_slice %111 {offsets = [0, 0], sizes = [8, 128], strides = [1, 1]} : vector<8x384xf32> to vector<8x128xf32>
    %114 = arith.addf %112, %113 : vector<8x128xf32>
    %115 = arith.negf %114 : vector<8x128xf32>
    %116 = math.exp %115 : vector<8x128xf32>
    %cst_30 = arith.constant 1.000000e+00 : f32
    %117 = vector.broadcast %cst_30 : f32 to vector<8x128xf32>
    %118 = arith.addf %117, %116 : vector<8x128xf32>
    %119 = arith.divf %117, %118 : vector<8x128xf32>
    %120 = vector.extract_strided_slice %110 {offsets = [0, 128], sizes = [8, 128], strides = [1, 1]} : vector<8x384xf32> to vector<8x128xf32>
    %121 = vector.extract_strided_slice %111 {offsets = [0, 128], sizes = [8, 128], strides = [1, 1]} : vector<8x384xf32> to vector<8x128xf32>
    %122 = arith.addf %120, %121 : vector<8x128xf32>
    %123 = arith.negf %122 : vector<8x128xf32>
    %124 = math.exp %123 : vector<8x128xf32>
    %cst_31 = arith.constant 1.000000e+00 : f32
    %125 = vector.broadcast %cst_31 : f32 to vector<8x128xf32>
    %126 = arith.addf %125, %124 : vector<8x128xf32>
    %127 = arith.divf %125, %126 : vector<8x128xf32>
    %128 = vector.extract_strided_slice %110 {offsets = [0, 256], sizes = [8, 128], strides = [1, 1]} : vector<8x384xf32> to vector<8x128xf32>
    %129 = vector.extract_strided_slice %111 {offsets = [0, 256], sizes = [8, 128], strides = [1, 1]} : vector<8x384xf32> to vector<8x128xf32>
    %130 = vector.broadcast %4 : vector<1x128xf32> to vector<8x128xf32>
    %131 = arith.addf %129, %130 : vector<8x128xf32>
    %132 = arith.mulf %119, %131 : vector<8x128xf32>
    %133 = arith.addf %128, %132 : vector<8x128xf32>
    %134 = math.tanh %133 : vector<8x128xf32>
    %135 = arith.subf %103, %134 : vector<8x128xf32>
    %136 = arith.mulf %127, %135 : vector<8x128xf32>
    %137 = arith.addf %134, %136 : vector<8x128xf32>
    %138 = arith.index_cast %c3_i32 : i32 to index
    %c0_32 = arith.constant 0 : index
    %c0_33 = arith.constant 0 : index
    %139 = vector.load %arg5[%138, %c0_32, %c0_33] : memref<8x8x128xf32, #tpu.memory_space<vmem>>, vector<1x8x128xf32>
    %140 = vector.shape_cast %139 : vector<1x8x128xf32> to vector<8x128xf32>
    %141 = vector.shape_cast %137 : vector<8x128xf32> to vector<1x8x128xf32>
    tpu.vector_store %arg5[%138, %c0_32, %c0_33], %141 {strides = array<i32>} : memref<8x8x128xf32, #tpu.memory_space<vmem>>, vector<1x8x128xf32>,
    %c4_i32 = arith.constant 4 : i32
    %142 = arith.index_cast %c4_i32 : i32 to index
    %c0_34 = arith.constant 0 : index
    %c0_35 = arith.constant 0 : index
    %143 = vector.load %arg1[%142, %c0_34, %c0_35] : memref<8x8x384xf32, #tpu.memory_space<vmem>>, vector<1x8x384xf32>
    %144 = vector.shape_cast %143 : vector<1x8x384xf32> to vector<8x384xf32>
    %cst_36 = arith.constant dense<0.000000e+00> : vector<8x384xf32>
    %145 = tpu.matmul %137, %3, %cst_36 {dimension_numbers = #tpu.dot_dimension_numbers<[1], [0], [0], [1], [0, 0, 1, 1], [], []>} : vector<8x128xf32>, vector<128x384xf32>, vector<8x384xf32> -> vector<8x384xf32>
    %146 = vector.extract_strided_slice %144 {offsets = [0, 0], sizes = [8, 128], strides = [1, 1]} : vector<8x384xf32> to vector<8x128xf32>
    %147 = vector.extract_strided_slice %145 {offsets = [0, 0], sizes = [8, 128], strides = [1, 1]} : vector<8x384xf32> to vector<8x128xf32>
    %148 = arith.addf %146, %147 : vector<8x128xf32>
    %149 = arith.negf %148 : vector<8x128xf32>
    %150 = math.exp %149 : vector<8x128xf32>
    %cst_37 = arith.constant 1.000000e+00 : f32
    %151 = vector.broadcast %cst_37 : f32 to vector<8x128xf32>
    %152 = arith.addf %151, %150 : vector<8x128xf32>
    %153 = arith.divf %151, %152 : vector<8x128xf32>
    %154 = vector.extract_strided_slice %144 {offsets = [0, 128], sizes = [8, 128], strides = [1, 1]} : vector<8x384xf32> to vector<8x128xf32>
    %155 = vector.extract_strided_slice %145 {offsets = [0, 128], sizes = [8, 128], strides = [1, 1]} : vector<8x384xf32> to vector<8x128xf32>
    %156 = arith.addf %154, %155 : vector<8x128xf32>
    %157 = arith.negf %156 : vector<8x128xf32>
    %158 = math.exp %157 : vector<8x128xf32>
    %cst_38 = arith.constant 1.000000e+00 : f32
    %159 = vector.broadcast %cst_38 : f32 to vector<8x128xf32>
    %160 = arith.addf %159, %158 : vector<8x128xf32>
    %161 = arith.divf %159, %160 : vector<8x128xf32>
    %162 = vector.extract_strided_slice %144 {offsets = [0, 256], sizes = [8, 128], strides = [1, 1]} : vector<8x384xf32> to vector<8x128xf32>
    %163 = vector.extract_strided_slice %145 {offsets = [0, 256], sizes = [8, 128], strides = [1, 1]} : vector<8x384xf32> to vector<8x128xf32>
    %164 = vector.broadcast %4 : vector<1x128xf32> to vector<8x128xf32>
    %165 = arith.addf %163, %164 : vector<8x128xf32>
    %166 = arith.mulf %153, %165 : vector<8x128xf32>
    %167 = arith.addf %162, %166 : vector<8x128xf32>
    %168 = math.tanh %167 : vector<8x128xf32>
    %169 = arith.subf %137, %168 : vector<8x128xf32>
    %170 = arith.mulf %161, %169 : vector<8x128xf32>
    %171 = arith.addf %168, %170 : vector<8x128xf32>
    %172 = arith.index_cast %c4_i32 : i32 to index
    %c0_39 = arith.constant 0 : index
    %c0_40 = arith.constant 0 : index
    %173 = vector.load %arg5[%172, %c0_39, %c0_40] : memref<8x8x128xf32, #tpu.memory_space<vmem>>, vector<1x8x128xf32>
    %174 = vector.shape_cast %173 : vector<1x8x128xf32> to vector<8x128xf32>
    %175 = vector.shape_cast %171 : vector<8x128xf32> to vector<1x8x128xf32>
    tpu.vector_store %arg5[%172, %c0_39, %c0_40], %175 {strides = array<i32>} : memref<8x8x128xf32, #tpu.memory_space<vmem>>, vector<1x8x128xf32>,
    %c5_i32 = arith.constant 5 : i32
    %176 = arith.index_cast %c5_i32 : i32 to index
    %c0_41 = arith.constant 0 : index
    %c0_42 = arith.constant 0 : index
    %177 = vector.load %arg1[%176, %c0_41, %c0_42] : memref<8x8x384xf32, #tpu.memory_space<vmem>>, vector<1x8x384xf32>
    %178 = vector.shape_cast %177 : vector<1x8x384xf32> to vector<8x384xf32>
    %cst_43 = arith.constant dense<0.000000e+00> : vector<8x384xf32>
    %179 = tpu.matmul %171, %3, %cst_43 {dimension_numbers = #tpu.dot_dimension_numbers<[1], [0], [0], [1], [0, 0, 1, 1], [], []>} : vector<8x128xf32>, vector<128x384xf32>, vector<8x384xf32> -> vector<8x384xf32>
    %180 = vector.extract_strided_slice %178 {offsets = [0, 0], sizes = [8, 128], strides = [1, 1]} : vector<8x384xf32> to vector<8x128xf32>
    %181 = vector.extract_strided_slice %179 {offsets = [0, 0], sizes = [8, 128], strides = [1, 1]} : vector<8x384xf32> to vector<8x128xf32>
    %182 = arith.addf %180, %181 : vector<8x128xf32>
    %183 = arith.negf %182 : vector<8x128xf32>
    %184 = math.exp %183 : vector<8x128xf32>
    %cst_44 = arith.constant 1.000000e+00 : f32
    %185 = vector.broadcast %cst_44 : f32 to vector<8x128xf32>
    %186 = arith.addf %185, %184 : vector<8x128xf32>
    %187 = arith.divf %185, %186 : vector<8x128xf32>
    %188 = vector.extract_strided_slice %178 {offsets = [0, 128], sizes = [8, 128], strides = [1, 1]} : vector<8x384xf32> to vector<8x128xf32>
    %189 = vector.extract_strided_slice %179 {offsets = [0, 128], sizes = [8, 128], strides = [1, 1]} : vector<8x384xf32> to vector<8x128xf32>
    %190 = arith.addf %188, %189 : vector<8x128xf32>
    %191 = arith.negf %190 : vector<8x128xf32>
    %192 = math.exp %191 : vector<8x128xf32>
    %cst_45 = arith.constant 1.000000e+00 : f32
    %193 = vector.broadcast %cst_45 : f32 to vector<8x128xf32>
    %194 = arith.addf %193, %192 : vector<8x128xf32>
    %195 = arith.divf %193, %194 : vector<8x128xf32>
    %196 = vector.extract_strided_slice %178 {offsets = [0, 256], sizes = [8, 128], strides = [1, 1]} : vector<8x384xf32> to vector<8x128xf32>
    %197 = vector.extract_strided_slice %179 {offsets = [0, 256], sizes = [8, 128], strides = [1, 1]} : vector<8x384xf32> to vector<8x128xf32>
    %198 = vector.broadcast %4 : vector<1x128xf32> to vector<8x128xf32>
    %199 = arith.addf %197, %198 : vector<8x128xf32>
    %200 = arith.mulf %187, %199 : vector<8x128xf32>
    %201 = arith.addf %196, %200 : vector<8x128xf32>
    %202 = math.tanh %201 : vector<8x128xf32>
    %203 = arith.subf %171, %202 : vector<8x128xf32>
    %204 = arith.mulf %195, %203 : vector<8x128xf32>
    %205 = arith.addf %202, %204 : vector<8x128xf32>
    %206 = arith.index_cast %c5_i32 : i32 to index
    %c0_46 = arith.constant 0 : index
    %c0_47 = arith.constant 0 : index
    %207 = vector.load %arg5[%206, %c0_46, %c0_47] : memref<8x8x128xf32, #tpu.memory_space<vmem>>, vector<1x8x128xf32>
    %208 = vector.shape_cast %207 : vector<1x8x128xf32> to vector<8x128xf32>
    %209 = vector.shape_cast %205 : vector<8x128xf32> to vector<1x8x128xf32>
    tpu.vector_store %arg5[%206, %c0_46, %c0_47], %209 {strides = array<i32>} : memref<8x8x128xf32, #tpu.memory_space<vmem>>, vector<1x8x128xf32>,
    %c6_i32 = arith.constant 6 : i32
    %210 = arith.index_cast %c6_i32 : i32 to index
    %c0_48 = arith.constant 0 : index
    %c0_49 = arith.constant 0 : index
    %211 = vector.load %arg1[%210, %c0_48, %c0_49] : memref<8x8x384xf32, #tpu.memory_space<vmem>>, vector<1x8x384xf32>
    %212 = vector.shape_cast %211 : vector<1x8x384xf32> to vector<8x384xf32>
    %cst_50 = arith.constant dense<0.000000e+00> : vector<8x384xf32>
    %213 = tpu.matmul %205, %3, %cst_50 {dimension_numbers = #tpu.dot_dimension_numbers<[1], [0], [0], [1], [0, 0, 1, 1], [], []>} : vector<8x128xf32>, vector<128x384xf32>, vector<8x384xf32> -> vector<8x384xf32>
    %214 = vector.extract_strided_slice %212 {offsets = [0, 0], sizes = [8, 128], strides = [1, 1]} : vector<8x384xf32> to vector<8x128xf32>
    %215 = vector.extract_strided_slice %213 {offsets = [0, 0], sizes = [8, 128], strides = [1, 1]} : vector<8x384xf32> to vector<8x128xf32>
    %216 = arith.addf %214, %215 : vector<8x128xf32>
    %217 = arith.negf %216 : vector<8x128xf32>
    %218 = math.exp %217 : vector<8x128xf32>
    %cst_51 = arith.constant 1.000000e+00 : f32
    %219 = vector.broadcast %cst_51 : f32 to vector<8x128xf32>
    %220 = arith.addf %219, %218 : vector<8x128xf32>
    %221 = arith.divf %219, %220 : vector<8x128xf32>
    %222 = vector.extract_strided_slice %212 {offsets = [0, 128], sizes = [8, 128], strides = [1, 1]} : vector<8x384xf32> to vector<8x128xf32>
    %223 = vector.extract_strided_slice %213 {offsets = [0, 128], sizes = [8, 128], strides = [1, 1]} : vector<8x384xf32> to vector<8x128xf32>
    %224 = arith.addf %222, %223 : vector<8x128xf32>
    %225 = arith.negf %224 : vector<8x128xf32>
    %226 = math.exp %225 : vector<8x128xf32>
    %cst_52 = arith.constant 1.000000e+00 : f32
    %227 = vector.broadcast %cst_52 : f32 to vector<8x128xf32>
    %228 = arith.addf %227, %226 : vector<8x128xf32>
    %229 = arith.divf %227, %228 : vector<8x128xf32>
    %230 = vector.extract_strided_slice %212 {offsets = [0, 256], sizes = [8, 128], strides = [1, 1]} : vector<8x384xf32> to vector<8x128xf32>
    %231 = vector.extract_strided_slice %213 {offsets = [0, 256], sizes = [8, 128], strides = [1, 1]} : vector<8x384xf32> to vector<8x128xf32>
    %232 = vector.broadcast %4 : vector<1x128xf32> to vector<8x128xf32>
    %233 = arith.addf %231, %232 : vector<8x128xf32>
    %234 = arith.mulf %221, %233 : vector<8x128xf32>
    %235 = arith.addf %230, %234 : vector<8x128xf32>
    %236 = math.tanh %235 : vector<8x128xf32>
    %237 = arith.subf %205, %236 : vector<8x128xf32>
    %238 = arith.mulf %229, %237 : vector<8x128xf32>
    %239 = arith.addf %236, %238 : vector<8x128xf32>
    %240 = arith.index_cast %c6_i32 : i32 to index
    %c0_53 = arith.constant 0 : index
    %c0_54 = arith.constant 0 : index
    %241 = vector.load %arg5[%240, %c0_53, %c0_54] : memref<8x8x128xf32, #tpu.memory_space<vmem>>, vector<1x8x128xf32>
    %242 = vector.shape_cast %241 : vector<1x8x128xf32> to vector<8x128xf32>
    %243 = vector.shape_cast %239 : vector<8x128xf32> to vector<1x8x128xf32>
    tpu.vector_store %arg5[%240, %c0_53, %c0_54], %243 {strides = array<i32>} : memref<8x8x128xf32, #tpu.memory_space<vmem>>, vector<1x8x128xf32>,
    %c7_i32 = arith.constant 7 : i32
    %244 = arith.index_cast %c7_i32 : i32 to index
    %c0_55 = arith.constant 0 : index
    %c0_56 = arith.constant 0 : index
    %245 = vector.load %arg1[%244, %c0_55, %c0_56] : memref<8x8x384xf32, #tpu.memory_space<vmem>>, vector<1x8x384xf32>
    %246 = vector.shape_cast %245 : vector<1x8x384xf32> to vector<8x384xf32>
    %cst_57 = arith.constant dense<0.000000e+00> : vector<8x384xf32>
    %247 = tpu.matmul %239, %3, %cst_57 {dimension_numbers = #tpu.dot_dimension_numbers<[1], [0], [0], [1], [0, 0, 1, 1], [], []>} : vector<8x128xf32>, vector<128x384xf32>, vector<8x384xf32> -> vector<8x384xf32>
    %248 = vector.extract_strided_slice %246 {offsets = [0, 0], sizes = [8, 128], strides = [1, 1]} : vector<8x384xf32> to vector<8x128xf32>
    %249 = vector.extract_strided_slice %247 {offsets = [0, 0], sizes = [8, 128], strides = [1, 1]} : vector<8x384xf32> to vector<8x128xf32>
    %250 = arith.addf %248, %249 : vector<8x128xf32>
    %251 = arith.negf %250 : vector<8x128xf32>
    %252 = math.exp %251 : vector<8x128xf32>
    %cst_58 = arith.constant 1.000000e+00 : f32
    %253 = vector.broadcast %cst_58 : f32 to vector<8x128xf32>
    %254 = arith.addf %253, %252 : vector<8x128xf32>
    %255 = arith.divf %253, %254 : vector<8x128xf32>
    %256 = vector.extract_strided_slice %246 {offsets = [0, 128], sizes = [8, 128], strides = [1, 1]} : vector<8x384xf32> to vector<8x128xf32>
    %257 = vector.extract_strided_slice %247 {offsets = [0, 128], sizes = [8, 128], strides = [1, 1]} : vector<8x384xf32> to vector<8x128xf32>
    %258 = arith.addf %256, %257 : vector<8x128xf32>
    %259 = arith.negf %258 : vector<8x128xf32>
    %260 = math.exp %259 : vector<8x128xf32>
    %cst_59 = arith.constant 1.000000e+00 : f32
    %261 = vector.broadcast %cst_59 : f32 to vector<8x128xf32>
    %262 = arith.addf %261, %260 : vector<8x128xf32>
    %263 = arith.divf %261, %262 : vector<8x128xf32>
    %264 = vector.extract_strided_slice %246 {offsets = [0, 256], sizes = [8, 128], strides = [1, 1]} : vector<8x384xf32> to vector<8x128xf32>
    %265 = vector.extract_strided_slice %247 {offsets = [0, 256], sizes = [8, 128], strides = [1, 1]} : vector<8x384xf32> to vector<8x128xf32>
    %266 = vector.broadcast %4 : vector<1x128xf32> to vector<8x128xf32>
    %267 = arith.addf %265, %266 : vector<8x128xf32>
    %268 = arith.mulf %255, %267 : vector<8x128xf32>
    %269 = arith.addf %264, %268 : vector<8x128xf32>
    %270 = math.tanh %269 : vector<8x128xf32>
    %271 = arith.subf %239, %270 : vector<8x128xf32>
    %272 = arith.mulf %263, %271 : vector<8x128xf32>
    %273 = arith.addf %270, %272 : vector<8x128xf32>
    %274 = arith.index_cast %c7_i32 : i32 to index
    %c0_60 = arith.constant 0 : index
    %c0_61 = arith.constant 0 : index
    %275 = vector.load %arg5[%274, %c0_60, %c0_61] : memref<8x8x128xf32, #tpu.memory_space<vmem>>, vector<1x8x128xf32>
    %276 = vector.shape_cast %275 : vector<1x8x128xf32> to vector<8x128xf32>
    %277 = vector.shape_cast %273 : vector<8x128xf32> to vector<1x8x128xf32>
    tpu.vector_store %arg5[%274, %c0_60, %c0_61], %277 {strides = array<i32>} : memref<8x8x128xf32, #tpu.memory_space<vmem>>, vector<1x8x128xf32>,
    %c8_i32 = arith.constant 8 : i32
    %c0_62 = arith.constant 0 : index
    %c0_63 = arith.constant 0 : index
    %278 = vector.load %arg6[%c0_62, %c0_63] : memref<8x128xf32, #tpu.memory_space<vmem>>, vector<8x128xf32>
    tpu.vector_store %arg6[%c0_62, %c0_63], %273 {strides = array<i32>} : memref<8x128xf32, #tpu.memory_space<vmem>>, vector<8x128xf32>,
    return
  }
  func.func @transform_0(%arg0: i32) -> (i32, i32, i32) {
    %c0_i32 = arith.constant 0 : i32
    %c0_i32_0 = arith.constant 0 : i32
    %c0_i32_1 = arith.constant 0 : i32
    return %arg0, %c0_i32, %c0_i32_0 : i32, i32, i32
  }
  func.func @transform_1(%arg0: i32) -> (i32, i32) {
    %c0_i32 = arith.constant 0 : i32
    %c0_i32_0 = arith.constant 0 : i32
    %c0_i32_1 = arith.constant 0 : i32
    return %c0_i32, %c0_i32_0 : i32, i32
  }
  func.func @transform_2(%arg0: i32) -> (i32, i32) {
    %c0_i32 = arith.constant 0 : i32
    %c0_i32_0 = arith.constant 0 : i32
    %c0_i32_1 = arith.constant 0 : i32
    return %c0_i32, %c0_i32_0 : i32, i32
  }
  func.func @transform_3(%arg0: i32) -> (i32, i32) {
    %c0_i32 = arith.constant 0 : i32
    %c0_i32_0 = arith.constant 0 : i32
    %c0_i32_1 = arith.constant 0 : i32
    return %c0_i32, %c0_i32_0 : i32, i32
  }
  func.func @transform_4(%arg0: i32) -> (i32, i32, i32) {
    %c0_i32 = arith.constant 0 : i32
    %c0_i32_0 = arith.constant 0 : i32
    %c0_i32_1 = arith.constant 0 : i32
    return %arg0, %c0_i32, %c0_i32_0 : i32, i32, i32
  }
  func.func @transform_5(%arg0: i32) -> (i32, i32) {
    %c0_i32 = arith.constant 0 : i32
    %c0_i32_0 = arith.constant 0 : i32
    %c0_i32_1 = arith.constant 0 : i32
    return %c0_i32, %c0_i32_0 : i32, i32
  }
}

</mosaic_0001>

<bundles_post_ra>
// kernel: rnn_forward.1
= control target key start
LH: loop header
LB: loop body
LE: loop exit
PB: predicated region body
PF: predicated region fallthrough
CT: control target
= control target key end

     0   :  { %v3235_v3 = vmov 0.0   ;;  %vm2025_vm0 = vmmov 0   ;;  %s3229_s2 = inlined_call_operand.vmem [shape: f32[128,384], index: 2, kind: input, shape index: {}]   ;;  %s3230_s1 = inlined_call_operand.vmem [shape: f32[8,128], index: 1, kind: input, shape index: {}]   ;;  %s3231_s0 = inlined_call_operand.vmem [shape: f32[8,8,384], index: 0, kind: input, shape index: {}]   ;;  %s3232_s3 = inlined_call_operand.vmem [shape: f32[1,128], index: 3, kind: input, shape index: {}]   ;;  %s3233_s4 = inlined_call_operand.vmem [shape: f32[8,8,128], index: 4, kind: output, shape index: {0}]   ;;  %s3234_s5 = inlined_call_operand.vmem [shape: f32[8,128], index: 5, kind: output, shape index: {1}]  }
   0x1   :  { %v2059_v0 = vld [vmem:[%s3229_s2 + $0x170] sm:$0xff]  ;;  %v2064_v1 = vld [vmem:[%s3229_s2 + $0x168] sm:$0xff]  ;;  %v2069_v2 = vld [vmem:[%s3229_s2 + $0x158] sm:$0xff]  ;;  %1613 = vmatprep.subr.mxu1 %v3235_v3  ;;  %142 = vmatprep.mubr.f32.mxu0 %v3235_v3 }
   0x2   :  { %3242 = vst [vmem:[#allocation2_spill] sm:$0xff] %v2059_v0  ;;  %78 = vmatprep.subr.mxu0 %v2059_v0  ;;  %v2077_v4 = vld [vmem:[%s3229_s2 + $0x150] sm:$0xff]  ;;  %1645 = vmatprep.mubr.msk.f32.mxu1 %vm2025_vm0, %v3235_v3  ;;  %v2085_v5 = vld [vmem:[%s3229_s2 + $0x140] sm:$0xff]  ;;  %v2091_v6 = vld [vmem:[%s3229_s2 + $0x138] sm:$0xff] }
   0x3   :  { %79 = vmatpush1.msra.mxu0 %v2064_v1  ;;  %v2097_v7 = vld [vmem:[%s3229_s2 + $0x128] sm:$0xff]  ;;  %v2103_v8 = vld [vmem:[%s3229_s2 + $0x120] sm:$0xff]  ;;  %v2109_v9 = vld [vmem:[%s3229_s2 + $0x110] sm:$0xff] }
   0x4   :  { %80 = vmatprep.subr.mxu0 %v2069_v2  ;;  %v2115_v10 = vld [vmem:[%s3229_s2 + $0x108] sm:$0xff]  ;;  %v2121_v11 = vld [vmem:[%s3229_s2 + $0xf8] sm:$0xff]  ;;  %v2127_v12 = vld [vmem:[%s3229_s2 + $0xf0] sm:$0xff] }
   0x5   :  { %81 = vmatpush1.msra.mxu0 %v2077_v4  ;;  %v2133_v13 = vld [vmem:[%s3229_s2 + $0xe0] sm:$0xff]  ;;  %v2138_v14 = vld [vmem:[%s3229_s2 + $0x178] sm:$0xff]  ;;  %v2156_v17 = vld [vmem:[%s3229_s2 + $0xc8] sm:$0xff] }
   0x6   :  { %82 = vmatprep.subr.mxu0 %v2085_v5  ;;  %v2144_v15 = vld [vmem:[%s3229_s2 + $0xd8] sm:$0xff]  ;;  %1614 = vmatpush3.msra.mxu1 %v2138_v14  ;;  %v2150_v16 = vld [vmem:[%s3229_s2 + $0x160] sm:$0xff]  ;;  %v2162_v18 = vld [vmem:[%s3229_s2 + $0x148] sm:$0xff] }
   0x7   :  { %83 = vmatpush1.msra.mxu0 %v2091_v6  ;;  %1615 = vmatprep.subr.mxu1 %v3235_v3  ;;  %v2168_v19 = vld [vmem:[%s3229_s2 + $0xc0] sm:$0xff]  ;;  %v2175_v20 = vld [vmem:[%s3229_s2 + $0xb0] sm:$0xff]  ;;  %v2187_v22 = vld [vmem:[%s3229_s2 + $0xa8] sm:$0xff] }
   0x8   :  { %84 = vmatprep.subr.mxu0 %v2097_v7  ;;  %1616 = vmatpush3.msra.mxu1 %v2150_v16  ;;  %v2181_v21 = vld [vmem:[%s3229_s2 + $0x130] sm:$0xff]  ;;  %v2194_v23 = vld [vmem:[%s3229_s2 + $0x98] sm:$0xff]  ;;  %v2213_v26 = vld [vmem:[%s3229_s2 + $0x80] sm:$0xff] }
   0x9   :  { %85 = vmatpush1.msra.mxu0 %v2103_v8  ;;  %1617 = vmatprep.subr.mxu1 %v3235_v3  ;;  %v2200_v24 = vld [vmem:[%s3229_s2 + $0x118] sm:$0xff]  ;;  %v2206_v25 = vld [vmem:[%s3229_s2 + $0x90] sm:$0xff]  ;;  %v2219_v27 = vld [vmem:[%s3229_s2 + $0x100] sm:$0xff] }
   0xa   :  { %86 = vmatprep.subr.mxu0 %v2109_v9  ;;  %1618 = vmatpush3.msra.mxu1 %v2162_v18  ;;  %v2225_v28 = vld [vmem:[%s3229_s2 + $0x78] sm:$0xff]  ;;  %v2232_v29 = vld [vmem:[%s3229_s2 + $0x68] sm:$0xff]  ;;  %v2244_v31 = vld [vmem:[%s3229_s2 + $0x60] sm:$0xff] }
   0xb   :  { %87 = vmatpush1.msra.mxu0 %v2115_v10  ;;  %1619 = vmatprep.subr.mxu1 %v3235_v3  ;;  %v2238_v30 = vld [vmem:[%s3229_s2 + $0xe8] sm:$0xff]  ;;  %v2251_v32 = vld [vmem:[%s3229_s2 + $0x50] sm:$0xff]  ;;  %v2270_v35 = vld [vmem:[%s3229_s2 + $0x38] sm:$0xff] }
   0xc   :  { %88 = vmatprep.subr.mxu0 %v2121_v11  ;;  %1620 = vmatpush3.msra.mxu1 %v2181_v21  ;;  %v2257_v33 = vld [vmem:[%s3229_s2 + $0xd0] sm:$0xff]  ;;  %v2263_v34 = vld [vmem:[%s3229_s2 + $0x48] sm:$0xff]  ;;  %v2276_v36 = vld [vmem:[%s3229_s2 + $0xb8] sm:$0xff] }
   0xd   :  { %89 = vmatpush1.msra.mxu0 %v2127_v12  ;;  %1621 = vmatprep.subr.mxu1 %v3235_v3  ;;  %v2282_v37 = vld [vmem:[%s3229_s2 + $0x30] sm:$0xff]  ;;  %v2289_v38 = vld [vmem:[%s3229_s2 + $0x20] sm:$0xff]  ;;  %v2301_v40 = vld [vmem:[%s3229_s2 + $0x18] sm:$0xff] }
   0xe   :  { %90 = vmatprep.subr.mxu0 %v2133_v13  ;;  %1622 = vmatpush3.msra.mxu1 %v2200_v24  ;;  %v2295_v39 = vld [vmem:[%s3229_s2 + $0xa0] sm:$0xff]  ;;  %v2308_v41 = vld [vmem:[%s3229_s2 + $0x8] sm:$0xff]  ;;  %v2333_v45 = vld [vmem:[%s3229_s2 + $0x70] sm:$0xff] }
   0xf   :  { %91 = vmatpush1.msra.mxu0 %v2144_v15  ;;  %1623 = vmatprep.subr.mxu1 %v3235_v3  ;;  %v2314_v42 = vld [vmem:[%s3229_s2 + $0x88] sm:$0xff]  ;;  %v2320_v43 = vld [vmem:[%s3229_s2] sm:$0xff]  ;;  %v2342_v46 = vld [vmem:[%s3229_s2 + $0x58] sm:$0xff] }
  0x10   :  { %92 = vmatprep.subr.mxu0 %v2156_v17  ;;  %1624 = vmatpush3.msra.mxu1 %v2219_v27  ;;  %v2327_v44 = vld [vmem:[%s3230_s1] sm:$0xff]  ;;  %v2359_v48 = vld [vmem:[%s3229_s2 + $0x28] sm:$0xff]  ;;  %v2368_v49 = vld [vmem:[%s3229_s2 + $0x10] sm:$0xff] }
  0x11   :  { %93 = vmatpush1.msra.mxu0 %v2168_v19  ;;  %1625 = vmatprep.subr.mxu1 %v3235_v3  ;;  %v2350_v47 = vld [vmem:[%s3229_s2 + $0x40] sm:$0xff]  ;;  %3243 = vst [vmem:[#allocation3_spill] sm:$0xff] %v2368_v49  ;;  %v76_v54 = vld [vmem:[%s3231_s0 + $0x8] sm:$0xff] }
  0x12   :  { %94 = vmatprep.subr.mxu0 %v2175_v20  ;;  %1626 = vmatpush3.msra.mxu1 %v2238_v30  ;;  %v75_v50 = vld [vmem:[%s3231_s0] sm:$0xff] }
  0x13   :  { %95 = vmatpush1.msra.mxu0 %v2187_v22  ;;  %1627 = vmatprep.subr.mxu1 %v3235_v3  ;;  %v2448_v62 = vld [vmem:[%s3232_s3] ss:$0 sm:$0xff] }
  0x14   :  { %96 = vmatprep.subr.mxu0 %v2194_v23  ;;  %1628 = vmatpush3.msra.mxu1 %v2257_v33 }
  0x15   :  { %97 = vmatpush1.msra.mxu0 %v2206_v25  ;;  %1629 = vmatprep.subr.mxu1 %v3235_v3 }
  0x16   :  { %98 = vmatprep.subr.mxu0 %v2213_v26  ;;  %1630 = vmatpush3.msra.mxu1 %v2276_v36 }
  0x17   :  { %99 = vmatpush1.msra.mxu0 %v2225_v28  ;;  %1631 = vmatprep.subr.mxu1 %v3235_v3 }
  0x18   :  { %100 = vmatprep.subr.mxu0 %v2232_v29  ;;  %1632 = vmatpush3.msra.mxu1 %v2295_v39 }
  0x19   :  { %101 = vmatpush1.msra.mxu0 %v2244_v31  ;;  %1633 = vmatprep.subr.mxu1 %v3235_v3 }
  0x1a   :  { %102 = vmatprep.subr.mxu0 %v2251_v32  ;;  %1634 = vmatpush3.msra.mxu1 %v2314_v42 }
  0x1b   :  { %103 = vmatpush1.msra.mxu0 %v2263_v34  ;;  %1635 = vmatprep.subr.mxu1 %v3235_v3 }
  0x1c   :  { %104 = vmatprep.subr.mxu0 %v2270_v35  ;;  %1636 = vmatpush3.msra.mxu1 %v2333_v45 }
  0x1d   :  { %105 = vmatpush1.msra.mxu0 %v2282_v37  ;;  %1637 = vmatprep.subr.mxu1 %v3235_v3 }
  0x1e   :  { %106 = vmatprep.subr.mxu0 %v2289_v38  ;;  %1638 = vmatpush3.msra.mxu1 %v2342_v46 }
  0x1f   :  { %107 = vmatpush1.msra.mxu0 %v2301_v40  ;;  %1639 = vmatprep.subr.mxu1 %v3235_v3 }
  0x20   :  { %108 = vmatprep.subr.mxu0 %v2308_v41  ;;  %1640 = vmatpush3.msra.mxu1 %v2350_v47 }
  0x21   :  { %109 = vmatpush1.msra.mxu0 %v2320_v43  ;;  %1641 = vmatprep.subr.mxu1 %v3235_v3 }
  0x22   :  { %143 = vmatmul.mubr.f32.vlgmr.msra.gmra.mxu0 %v2327_v44  ;;  %251 = vmatprep.subr.mxu0 %v2059_v0 }
  0x23   :  { %252 = vmatpush1.msra.mxu0 %v2064_v1  ;;  %1642 = vmatpush3.msra.mxu1 %v2359_v48 }
  0x24   :  { %253 = vmatprep.subr.mxu0 %v2069_v2  ;;  %1643 = vmatprep.subr.mxu1 %v3235_v3 }
  0x25   :  { %254 = vmatpush1.msra.mxu0 %v2077_v4  ;;  %1644 = vmatpush3.msra.mxu1 %v2368_v49 }
  0x26   :  { %255 = vmatprep.subr.mxu0 %v2085_v5  ;;  %1646 = vmatmul.mubr.f32.vlgmr.msra.gmra.mxu1 %v2327_v44 }
  0x27   :  { %256 = vmatpush1.msra.mxu0 %v2091_v6  ;;  %1648 = vmatprep.subr.mxu1 %v3235_v3 }
  0x28   :  { %257 = vmatprep.subr.mxu0 %v2097_v7  ;;  %1649 = vmatpush3.msra.mxu1 %v2138_v14 }
  0x29   :  { %258 = vmatpush1.msra.mxu0 %v2103_v8  ;;  %1650 = vmatprep.subr.mxu1 %v3235_v3 }
  0x2a   :  { %259 = vmatprep.subr.mxu0 %v2109_v9  ;;  %1651 = vmatpush3.msra.mxu1 %v2150_v16 }
  0x2b   :  { %260 = vmatpush1.msra.mxu0 %v2115_v10  ;;  %1652 = vmatprep.subr.mxu1 %v3235_v3 }
  0x2c   :  { %261 = vmatprep.subr.mxu0 %v2121_v11  ;;  %1653 = vmatpush3.msra.mxu1 %v2162_v18 }
  0x2d   :  { %262 = vmatpush1.msra.mxu0 %v2127_v12  ;;  %1654 = vmatprep.subr.mxu1 %v3235_v3 }
  0x2e   :  { %263 = vmatprep.subr.mxu0 %v2133_v13  ;;  %1655 = vmatpush3.msra.mxu1 %v2181_v21 }
  0x2f   :  { %264 = vmatpush1.msra.mxu0 %v2144_v15  ;;  %1656 = vmatprep.subr.mxu1 %v3235_v3 }
  0x30   :  { %265 = vmatprep.subr.mxu0 %v2156_v17  ;;  %1657 = vmatpush3.msra.mxu1 %v2200_v24 }
  0x31   :  { %266 = vmatpush1.msra.mxu0 %v2168_v19  ;;  %1658 = vmatprep.subr.mxu1 %v3235_v3 }
  0x32   :  { %267 = vmatprep.subr.mxu0 %v2175_v20  ;;  %1659 = vmatpush3.msra.mxu1 %v2219_v27 }
  0x33   :  { %268 = vmatpush1.msra.mxu0 %v2187_v22  ;;  %1660 = vmatprep.subr.mxu1 %v3235_v3 }
  0x34   :  { %269 = vmatprep.subr.mxu0 %v2194_v23  ;;  %1661 = vmatpush3.msra.mxu1 %v2238_v30 }
  0x35   :  { %270 = vmatpush1.msra.mxu0 %v2206_v25  ;;  %1662 = vmatprep.subr.mxu1 %v3235_v3 }
  0x36   :  { %271 = vmatprep.subr.mxu0 %v2213_v26  ;;  %1663 = vmatpush3.msra.mxu1 %v2257_v33 }
  0x37   :  { %272 = vmatpush1.msra.mxu0 %v2225_v28  ;;  %1664 = vmatprep.subr.mxu1 %v3235_v3 }
  0x38   :  { %273 = vmatprep.subr.mxu0 %v2232_v29  ;;  %1665 = vmatpush3.msra.mxu1 %v2276_v36 }
  0x39   :  { %274 = vmatpush1.msra.mxu0 %v2244_v31  ;;  %1666 = vmatprep.subr.mxu1 %v3235_v3 }
  0x3a   :  { %275 = vmatprep.subr.mxu0 %v2251_v32  ;;  %1667 = vmatpush3.msra.mxu1 %v2295_v39 }
  0x3b   :  { %276 = vmatpush1.msra.mxu0 %v2263_v34  ;;  %1668 = vmatprep.subr.mxu1 %v3235_v3 }
  0x3c   :  { %277 = vmatprep.subr.mxu0 %v2270_v35  ;;  %1669 = vmatpush3.msra.mxu1 %v2314_v42 }
  0x3d   :  { %278 = vmatpush1.msra.mxu0 %v2282_v37  ;;  %1670 = vmatprep.subr.mxu1 %v3235_v3 }
  0x3e   :  { %279 = vmatprep.subr.mxu0 %v2289_v38  ;;  %1671 = vmatpush3.msra.mxu1 %v2333_v45 }
  0x3f   :  { %280 = vmatpush1.msra.mxu0 %v2301_v40  ;;  %1672 = vmatprep.subr.mxu1 %v3235_v3 }
  0x40   :  { %281 = vmatprep.subr.mxu0 %v2308_v41  ;;  %1673 = vmatpush3.msra.mxu1 %v2342_v46 }
  0x41   :  { %282 = vmatpush1.msra.mxu0 %v2320_v43  ;;  %315 = vmatprep.mubr.f32.mxu0 %v3235_v3 }
  0x42   :  { %1674 = vmatprep.subr.mxu1 %v3235_v3  ;;  %1680 = vmatprep.mubr.msk.f32.mxu1 %vm2025_vm0, %v3235_v3 }
  0x43   :  { %1675 = vmatpush3.msra.mxu1 %v2350_v47  ;;  %419 = vmatprep.subr.mxu0 %v2059_v0 }
  0x44   :  { %1676 = vmatprep.subr.mxu1 %v3235_v3 }
  0x45   :  { %1677 = vmatpush3.msra.mxu1 %v2359_v48 }
  0x46   :  { %1678 = vmatprep.subr.mxu1 %v3235_v3 }
  0x47   :  { %1679 = vmatpush3.msra.mxu1 %v2368_v49 }
  0x48   :  { %1683 = vmatprep.subr.mxu1 %v3235_v3 }
  0xe2   :  { %v144_v51 = vpop.f32.mrf.mxu0 }
  0xe3   :  { %v219_v52 = vadd.f32 %v144_v51, %v75_v50 }
  0xe4   :  { %v146_v55 = vpop.f32.mrf.mxu0 }
  0xe5   :  { %v1432_v53 = vmul.f32 -1.442695, %v219_v52  ;;  %v226_v58 = vadd.f32 %v146_v55, %v76_v54  ;;  %v77_v52 = vld [vmem:[%s3231_s0 + $0x10] sm:$0xff] }
  0xe6   :  { %v215_v56 = vpop.f32.mrf.mxu1 }
  0xe7   :  { %1895 = vpow2.f32 %v1432_v53  ;;  %v1433_v59 = vmul.f32 -1.442695, %v226_v58  ;;  %v239_v63 = vadd.f32 %v2448_v62, %v215_v56 }
  0xe8   :  { %v1647_v57 = vpop.f32.mrf.mxu1 }
  0xe9   :  { %1897 = vpow2.f32 %v1433_v59 }
  0xf4   :  { %v1896_v60 = vpop.eup %1895 }
  0xf5   :  { %v223_v61 = vadd.f32 1.0, %v1896_v60 }
  0xf6   :  { %v1898_v50 = vpop.eup %1897 }
  0xf7   :  { %1899 = vrcp.f32 %v223_v61  ;;  %v230_v54 = vadd.f32 1.0, %v1898_v50 }
 0x104   :  { %v1900_v51 = vpop.eup %1899 }
 0x105   :  { %v240_v53 = vmul.f32 %v1900_v51, %v239_v63 }
 0x107   :  { %v241_v55 = vadd.f32 %v240_v53, %v77_v52  ;;  %v1436_v53 = vld [vmem:[%s3231_s0 + $0x20] sm:$0xff] }
 0x109   :  { %1901 = vtanh.f32 %v241_v55 }
 0x10a   :  { %1903 = vrcp.f32 %v230_v54 }
 0x116   :  { %v1902_v57 = vpop.eup %1901 }
 0x117   :  { %v243_v58 = vsub.f32 %v2327_v44, %v1902_v57  ;;  %v1904_v59 = vpop.eup %1903  ;;  %v1435_v44 = vld [vmem:[%s3231_s0 + $0x18] sm:$0xff] }
 0x119   :  { %v244_v60 = vmul.f32 %v1904_v59, %v243_v58 }
 0x11b   :  { %v2455_v61 = vadd.f32 %v1902_v57, %v244_v60 }
 0x11d   :  { %246 = vst [vmem:[%s3233_s4] sm:$0xff] %v2455_v61  ;;  %316 = vmatmul.mubr.f32.vlgmr.msra.gmra.mxu0 %v2455_v61  ;;  %1681 = vmatmul.mubr.f32.vlgmr.msra.gmra.mxu1 %v2455_v61 }
 0x11e   :  { %420 = vmatpush1.msra.mxu0 %v2064_v1  ;;  %1684 = vmatpush3.msra.mxu1 %v2138_v14 }
 0x11f   :  { %421 = vmatprep.subr.mxu0 %v2069_v2  ;;  %1685 = vmatprep.subr.mxu1 %v3235_v3 }
 0x120   :  { %422 = vmatpush1.msra.mxu0 %v2077_v4  ;;  %1686 = vmatpush3.msra.mxu1 %v2150_v16 }
 0x121   :  { %423 = vmatprep.subr.mxu0 %v2085_v5  ;;  %1687 = vmatprep.subr.mxu1 %v3235_v3 }
 0x122   :  { %424 = vmatpush1.msra.mxu0 %v2091_v6  ;;  %1688 = vmatpush3.msra.mxu1 %v2162_v18 }
 0x123   :  { %425 = vmatprep.subr.mxu0 %v2097_v7  ;;  %1689 = vmatprep.subr.mxu1 %v3235_v3 }
 0x124   :  { %426 = vmatpush1.msra.mxu0 %v2103_v8  ;;  %1690 = vmatpush3.msra.mxu1 %v2181_v21 }
 0x125   :  { %427 = vmatprep.subr.mxu0 %v2109_v9  ;;  %1691 = vmatprep.subr.mxu1 %v3235_v3 }
 0x126   :  { %428 = vmatpush1.msra.mxu0 %v2115_v10  ;;  %1692 = vmatpush3.msra.mxu1 %v2200_v24 }
 0x127   :  { %429 = vmatprep.subr.mxu0 %v2121_v11  ;;  %1693 = vmatprep.subr.mxu1 %v3235_v3 }
 0x128   :  { %430 = vmatpush1.msra.mxu0 %v2127_v12  ;;  %1694 = vmatpush3.msra.mxu1 %v2219_v27 }
 0x129   :  { %431 = vmatprep.subr.mxu0 %v2133_v13  ;;  %1695 = vmatprep.subr.mxu1 %v3235_v3 }
 0x12a   :  { %432 = vmatpush1.msra.mxu0 %v2144_v15  ;;  %1696 = vmatpush3.msra.mxu1 %v2238_v30 }
 0x12b   :  { %433 = vmatprep.subr.mxu0 %v2156_v17  ;;  %1697 = vmatprep.subr.mxu1 %v3235_v3 }
 0x12c   :  { %434 = vmatpush1.msra.mxu0 %v2168_v19  ;;  %1698 = vmatpush3.msra.mxu1 %v2257_v33 }
 0x12d   :  { %435 = vmatprep.subr.mxu0 %v2175_v20  ;;  %1699 = vmatprep.subr.mxu1 %v3235_v3 }
 0x12e   :  { %436 = vmatpush1.msra.mxu0 %v2187_v22  ;;  %1700 = vmatpush3.msra.mxu1 %v2276_v36 }
 0x12f   :  { %437 = vmatprep.subr.mxu0 %v2194_v23  ;;  %1701 = vmatprep.subr.mxu1 %v3235_v3 }
 0x130   :  { %438 = vmatpush1.msra.mxu0 %v2206_v25  ;;  %1702 = vmatpush3.msra.mxu1 %v2295_v39 }
 0x131   :  { %439 = vmatprep.subr.mxu0 %v2213_v26  ;;  %1703 = vmatprep.subr.mxu1 %v3235_v3 }
 0x132   :  { %440 = vmatpush1.msra.mxu0 %v2225_v28  ;;  %1704 = vmatpush3.msra.mxu1 %v2314_v42 }
 0x133   :  { %441 = vmatprep.subr.mxu0 %v2232_v29  ;;  %1705 = vmatprep.subr.mxu1 %v3235_v3 }
 0x134   :  { %442 = vmatpush1.msra.mxu0 %v2244_v31  ;;  %1706 = vmatpush3.msra.mxu1 %v2333_v45 }
 0x135   :  { %443 = vmatprep.subr.mxu0 %v2251_v32  ;;  %1707 = vmatprep.subr.mxu1 %v3235_v3 }
 0x136   :  { %444 = vmatpush1.msra.mxu0 %v2263_v34  ;;  %1708 = vmatpush3.msra.mxu1 %v2342_v46 }
 0x137   :  { %445 = vmatprep.subr.mxu0 %v2270_v35  ;;  %1709 = vmatprep.subr.mxu1 %v3235_v3 }
 0x138   :  { %446 = vmatpush1.msra.mxu0 %v2282_v37  ;;  %1710 = vmatpush3.msra.mxu1 %v2350_v47 }
 0x139   :  { %447 = vmatprep.subr.mxu0 %v2289_v38  ;;  %1711 = vmatprep.subr.mxu1 %v3235_v3 }
 0x13a   :  { %448 = vmatpush1.msra.mxu0 %v2301_v40  ;;  %1712 = vmatpush3.msra.mxu1 %v2359_v48 }
 0x13b   :  { %449 = vmatprep.subr.mxu0 %v2308_v41  ;;  %1713 = vmatprep.subr.mxu1 %v3235_v3 }
 0x13c   :  { %450 = vmatpush1.msra.mxu0 %v2320_v43  ;;  %483 = vmatprep.mubr.f32.mxu0 %v3235_v3 }
 0x13d   :  { %1714 = vmatpush3.msra.mxu1 %v2368_v49  ;;  %1715 = vmatprep.mubr.msk.f32.mxu1 %vm2025_vm0, %v3235_v3 }
 0x13e   :  { %587 = vmatprep.subr.mxu0 %v2059_v0  ;;  %1718 = vmatprep.subr.mxu1 %v3235_v3 }
 0x1dd   :  { %v317_v56 = vpop.f32.mrf.mxu0  ;;  %v388_v63 = vpop.f32.mrf.mxu1 }
 0x1de   :  { %v392_v50 = vadd.f32 %v1435_v44, %v317_v56  ;;  %v406_v3 = vadd.f32 %v2448_v62, %v388_v63  ;;  %v1437_v44 = vld [vmem:[%s3231_s0 + $0x28] sm:$0xff] }
 0x1df   :  { %v1682_v51 = vpop.f32.mrf.mxu1  ;;  %v319_v54 = vpop.f32.mrf.mxu0 }
 0x1e0   :  { %v1438_v52 = vmul.f32 -1.442695, %v392_v50  ;;  %v399_v55 = vadd.f32 %v1436_v53, %v319_v54 }
 0x1e2   :  { %1905 = vpow2.f32 %v1438_v52  ;;  %v1439_v57 = vmul.f32 -1.442695, %v399_v55 }
 0x1e4   :  { %1907 = vpow2.f32 %v1439_v57 }
 0x1ef   :  { %v1906_v58 = vpop.eup %1905 }
 0x1f0   :  { %v396_v59 = vadd.f32 1.0, %v1906_v58 }
 0x1f1   :  { %v1908_v60 = vpop.eup %1907 }
 0x1f2   :  { %1909 = vrcp.f32 %v396_v59  ;;  %v403_v51 = vadd.f32 1.0, %v1908_v60 }
 0x1ff   :  { %v1910_v0 = vpop.eup %1909 }
 0x200   :  { %v407_v56 = vmul.f32 %v1910_v0, %v406_v3  ;;  %v3244_v0 = vmov 0.0   ;;  %v3245_v3 = vld [vmem:[#allocation2_spill] sm:$0xff] }
 0x202   :  { %v408_v50 = vadd.f32 %v1437_v44, %v407_v56  ;;  %v1442_v56 = vld [vmem:[%s3231_s0 + $0x38] sm:$0xff] }
 0x204   :  { %1911 = vtanh.f32 %v408_v50 }
 0x205   :  { %1913 = vrcp.f32 %v403_v51 }
 0x211   :  { %v1912_v52 = vpop.eup %1911 }
 0x212   :  { %v410_v53 = vsub.f32 %v2455_v61, %v1912_v52  ;;  %v1914_v54 = vpop.eup %1913  ;;  %v1441_v61 = vld [vmem:[%s3231_s0 + $0x30] sm:$0xff] }
 0x214   :  { %v411_v55 = vmul.f32 %v1914_v54, %v410_v53 }
 0x216   :  { %v2541_v57 = vadd.f32 %v1912_v52, %v411_v55 }
 0x218   :  { %1440 = vst [vmem:[%s3233_s4 + $0x8] sm:$0xff] %v2541_v57  ;;  %484 = vmatmul.mubr.f32.vlgmr.msra.gmra.mxu0 %v2541_v57  ;;  %1716 = vmatmul.mubr.f32.vlgmr.msra.gmra.mxu1 %v2541_v57 }
 0x219   :  { %588 = vmatpush1.msra.mxu0 %v2064_v1  ;;  %1719 = vmatpush3.msra.mxu1 %v2138_v14 }
 0x21a   :  { %589 = vmatprep.subr.mxu0 %v2069_v2  ;;  %1720 = vmatprep.subr.mxu1 %v3244_v0 }
 0x21b   :  { %590 = vmatpush1.msra.mxu0 %v2077_v4  ;;  %1721 = vmatpush3.msra.mxu1 %v2150_v16 }
 0x21c   :  { %591 = vmatprep.subr.mxu0 %v2085_v5  ;;  %1722 = vmatprep.subr.mxu1 %v3244_v0 }
 0x21d   :  { %592 = vmatpush1.msra.mxu0 %v2091_v6  ;;  %1723 = vmatpush3.msra.mxu1 %v2162_v18 }
 0x21e   :  { %593 = vmatprep.subr.mxu0 %v2097_v7  ;;  %1724 = vmatprep.subr.mxu1 %v3244_v0 }
 0x21f   :  { %594 = vmatpush1.msra.mxu0 %v2103_v8  ;;  %1725 = vmatpush3.msra.mxu1 %v2181_v21 }
 0x220   :  { %595 = vmatprep.subr.mxu0 %v2109_v9  ;;  %1726 = vmatprep.subr.mxu1 %v3244_v0 }
 0x221   :  { %596 = vmatpush1.msra.mxu0 %v2115_v10  ;;  %1727 = vmatpush3.msra.mxu1 %v2200_v24 }
 0x222   :  { %597 = vmatprep.subr.mxu0 %v2121_v11  ;;  %1728 = vmatprep.subr.mxu1 %v3244_v0 }
 0x223   :  { %598 = vmatpush1.msra.mxu0 %v2127_v12  ;;  %1729 = vmatpush3.msra.mxu1 %v2219_v27 }
 0x224   :  { %599 = vmatprep.subr.mxu0 %v2133_v13  ;;  %1730 = vmatprep.subr.mxu1 %v3244_v0 }
 0x225   :  { %600 = vmatpush1.msra.mxu0 %v2144_v15  ;;  %1731 = vmatpush3.msra.mxu1 %v2238_v30 }
 0x226   :  { %601 = vmatprep.subr.mxu0 %v2156_v17  ;;  %1732 = vmatprep.subr.mxu1 %v3244_v0 }
 0x227   :  { %602 = vmatpush1.msra.mxu0 %v2168_v19  ;;  %1733 = vmatpush3.msra.mxu1 %v2257_v33 }
 0x228   :  { %603 = vmatprep.subr.mxu0 %v2175_v20  ;;  %1734 = vmatprep.subr.mxu1 %v3244_v0 }
 0x229   :  { %604 = vmatpush1.msra.mxu0 %v2187_v22  ;;  %1735 = vmatpush3.msra.mxu1 %v2276_v36 }
 0x22a   :  { %605 = vmatprep.subr.mxu0 %v2194_v23  ;;  %1736 = vmatprep.subr.mxu1 %v3244_v0 }
 0x22b   :  { %606 = vmatpush1.msra.mxu0 %v2206_v25  ;;  %1737 = vmatpush3.msra.mxu1 %v2295_v39 }
 0x22c   :  { %607 = vmatprep.subr.mxu0 %v2213_v26  ;;  %1738 = vmatprep.subr.mxu1 %v3244_v0 }
 0x22d   :  { %608 = vmatpush1.msra.mxu0 %v2225_v28  ;;  %1739 = vmatpush3.msra.mxu1 %v2314_v42 }
 0x22e   :  { %609 = vmatprep.subr.mxu0 %v2232_v29  ;;  %1740 = vmatprep.subr.mxu1 %v3244_v0 }
 0x22f   :  { %610 = vmatpush1.msra.mxu0 %v2244_v31  ;;  %1741 = vmatpush3.msra.mxu1 %v2333_v45 }
 0x230   :  { %611 = vmatprep.subr.mxu0 %v2251_v32  ;;  %1742 = vmatprep.subr.mxu1 %v3244_v0 }
 0x231   :  { %612 = vmatpush1.msra.mxu0 %v2263_v34  ;;  %1743 = vmatpush3.msra.mxu1 %v2342_v46 }
 0x232   :  { %613 = vmatprep.subr.mxu0 %v2270_v35  ;;  %1744 = vmatprep.subr.mxu1 %v3244_v0 }
 0x233   :  { %614 = vmatpush1.msra.mxu0 %v2282_v37  ;;  %1745 = vmatpush3.msra.mxu1 %v2350_v47 }
 0x234   :  { %615 = vmatprep.subr.mxu0 %v2289_v38  ;;  %1746 = vmatprep.subr.mxu1 %v3244_v0 }
 0x235   :  { %616 = vmatpush1.msra.mxu0 %v2301_v40  ;;  %1747 = vmatpush3.msra.mxu1 %v2359_v48 }
 0x236   :  { %617 = vmatprep.subr.mxu0 %v2308_v41  ;;  %1748 = vmatprep.subr.mxu1 %v3244_v0 }
 0x237   :  { %618 = vmatpush1.msra.mxu0 %v2320_v43  ;;  %651 = vmatprep.mubr.f32.mxu0 %v3244_v0 }
 0x238   :  { %1749 = vmatpush3.msra.mxu1 %v2368_v49  ;;  %1750 = vmatprep.mubr.msk.f32.mxu1 %vm2025_vm0, %v3244_v0 }
 0x239   :  { %755 = vmatprep.subr.mxu0 %v3245_v3  ;;  %1753 = vmatprep.subr.mxu1 %v3244_v0 }
 0x2d8   :  { %v485_v63 = vpop.f32.mrf.mxu0  ;;  %v556_v58 = vpop.f32.mrf.mxu1 }
 0x2d9   :  { %v560_v59 = vadd.f32 %v1441_v61, %v485_v63  ;;  %v574_v3 = vadd.f32 %v2448_v62, %v556_v58  ;;  %v1443_v61 = vld [vmem:[%s3231_s0 + $0x40] sm:$0xff] }
 0x2da   :  { %v1717_v60 = vpop.f32.mrf.mxu1  ;;  %v487_v50 = vpop.f32.mrf.mxu0 }
 0x2db   :  { %v1444_v44 = vmul.f32 -1.442695, %v560_v59  ;;  %v567_v51 = vadd.f32 %v1442_v56, %v487_v50 }
 0x2dd   :  { %1915 = vpow2.f32 %v1444_v44  ;;  %v1445_v52 = vmul.f32 -1.442695, %v567_v51 }
 0x2df   :  { %1917 = vpow2.f32 %v1445_v52 }
 0x2ea   :  { %v1916_v53 = vpop.eup %1915 }
 0x2eb   :  { %v564_v54 = vadd.f32 1.0, %v1916_v53  ;;  %v1449_v53 = vld [vmem:[%s3231_s0 + $0x58] sm:$0xff] }
 0x2ec   :  { %v1918_v55 = vpop.eup %1917 }
 0x2ed   :  { %1919 = vrcp.f32 %v564_v54  ;;  %v571_v60 = vadd.f32 1.0, %v1918_v55 }
 0x2fa   :  { %v1920_v49 = vpop.eup %1919 }
 0x2fb   :  { %v575_v63 = vmul.f32 %v1920_v49, %v574_v3 }
 0x2fd   :  { %v576_v59 = vadd.f32 %v1443_v61, %v575_v63 }
 0x2ff   :  { %1921 = vtanh.f32 %v576_v59 }
 0x300   :  { %1923 = vrcp.f32 %v571_v60 }
 0x30c   :  { %v1922_v44 = vpop.eup %1921 }
 0x30d   :  { %v578_v56 = vsub.f32 %v2541_v57, %v1922_v44  ;;  %v1924_v50 = vpop.eup %1923 }
 0x30f   :  { %v579_v51 = vmul.f32 %v1924_v50, %v578_v56  ;;  %v2724_v50 = vld [vmem:[%s3229_s2 + $0x168] sm:$0xff] }
 0x311   :  { %v2627_v52 = vadd.f32 %v1922_v44, %v579_v51  ;;  %v2731_v51 = vld [vmem:[%s3229_s2 + $0x158] sm:$0xff] }
 0x313   :  { %1446 = vst [vmem:[%s3233_s4 + $0x10] sm:$0xff] %v2627_v52  ;;  %652 = vmatmul.mubr.f32.vlgmr.msra.gmra.mxu0 %v2627_v52  ;;  %1751 = vmatmul.mubr.f32.vlgmr.msra.gmra.mxu1 %v2627_v52 }
 0x314   :  { %756 = vmatpush1.msra.mxu0 %v2064_v1  ;;  %1754 = vmatpush3.msra.mxu1 %v2138_v14  ;;  %v3246_v1 = vld [vmem:[#allocation3_spill] sm:$0xff] }
 0x315   :  { %757 = vmatprep.subr.mxu0 %v2069_v2  ;;  %1755 = vmatprep.subr.mxu1 %v3244_v0  ;;  %v3247_v2 = vld [vmem:[#allocation2_spill] sm:$0xff] }
 0x316   :  { %758 = vmatpush1.msra.mxu0 %v2077_v4  ;;  %1756 = vmatpush3.msra.mxu1 %v2150_v16  ;;  %v1447_v4 = vld [vmem:[%s3231_s0 + $0x48] sm:$0xff] }
 0x317   :  { %759 = vmatprep.subr.mxu0 %v2085_v5  ;;  %1757 = vmatprep.subr.mxu1 %v3244_v0 }
 0x318   :  { %760 = vmatpush1.msra.mxu0 %v2091_v6  ;;  %1758 = vmatpush3.msra.mxu1 %v2162_v18 }
 0x319   :  { %761 = vmatprep.subr.mxu0 %v2097_v7  ;;  %1759 = vmatprep.subr.mxu1 %v3244_v0 }
 0x31a   :  { %762 = vmatpush1.msra.mxu0 %v2103_v8  ;;  %1760 = vmatpush3.msra.mxu1 %v2181_v21 }
 0x31b   :  { %763 = vmatprep.subr.mxu0 %v2109_v9  ;;  %1761 = vmatprep.subr.mxu1 %v3244_v0 }
 0x31c   :  { %764 = vmatpush1.msra.mxu0 %v2115_v10  ;;  %1762 = vmatpush3.msra.mxu1 %v2200_v24  ;;  %v1448_v10 = vld [vmem:[%s3231_s0 + $0x50] sm:$0xff] }
 0x31d   :  { %765 = vmatprep.subr.mxu0 %v2121_v11  ;;  %1763 = vmatprep.subr.mxu1 %v3244_v0 }
 0x31e   :  { %766 = vmatpush1.msra.mxu0 %v2127_v12  ;;  %1764 = vmatpush3.msra.mxu1 %v2219_v27 }
 0x31f   :  { %767 = vmatprep.subr.mxu0 %v2133_v13  ;;  %1765 = vmatprep.subr.mxu1 %v3244_v0 }
 0x320   :  { %768 = vmatpush1.msra.mxu0 %v2144_v15  ;;  %1766 = vmatpush3.msra.mxu1 %v2238_v30 }
 0x321   :  { %769 = vmatprep.subr.mxu0 %v2156_v17  ;;  %1767 = vmatprep.subr.mxu1 %v3244_v0 }
 0x322   :  { %770 = vmatpush1.msra.mxu0 %v2168_v19  ;;  %1768 = vmatpush3.msra.mxu1 %v2257_v33 }
 0x323   :  { %771 = vmatprep.subr.mxu0 %v2175_v20  ;;  %1769 = vmatprep.subr.mxu1 %v3244_v0 }
 0x324   :  { %772 = vmatpush1.msra.mxu0 %v2187_v22  ;;  %1770 = vmatpush3.msra.mxu1 %v2276_v36 }
 0x325   :  { %773 = vmatprep.subr.mxu0 %v2194_v23  ;;  %1771 = vmatprep.subr.mxu1 %v3244_v0 }
 0x326   :  { %774 = vmatpush1.msra.mxu0 %v2206_v25  ;;  %1772 = vmatpush3.msra.mxu1 %v2295_v39 }
 0x327   :  { %775 = vmatprep.subr.mxu0 %v2213_v26  ;;  %1773 = vmatprep.subr.mxu1 %v3244_v0 }
 0x328   :  { %776 = vmatpush1.msra.mxu0 %v2225_v28  ;;  %1774 = vmatpush3.msra.mxu1 %v2314_v42 }
 0x329   :  { %777 = vmatprep.subr.mxu0 %v2232_v29  ;;  %1775 = vmatprep.subr.mxu1 %v3244_v0 }
 0x32a   :  { %778 = vmatpush1.msra.mxu0 %v2244_v31  ;;  %1776 = vmatpush3.msra.mxu1 %v2333_v45 }
 0x32b   :  { %779 = vmatprep.subr.mxu0 %v2251_v32  ;;  %1777 = vmatprep.subr.mxu1 %v3244_v0 }
 0x32c   :  { %780 = vmatpush1.msra.mxu0 %v2263_v34  ;;  %1778 = vmatpush3.msra.mxu1 %v2342_v46 }
 0x32d   :  { %781 = vmatprep.subr.mxu0 %v2270_v35  ;;  %1779 = vmatprep.subr.mxu1 %v3244_v0 }
 0x32e   :  { %782 = vmatpush1.msra.mxu0 %v2282_v37  ;;  %1780 = vmatpush3.msra.mxu1 %v2350_v47 }
 0x32f   :  { %783 = vmatprep.subr.mxu0 %v2289_v38  ;;  %1781 = vmatprep.subr.mxu1 %v3244_v0 }
 0x330   :  { %784 = vmatpush1.msra.mxu0 %v2301_v40  ;;  %1782 = vmatpush3.msra.mxu1 %v2359_v48 }
 0x331   :  { %785 = vmatprep.subr.mxu0 %v2308_v41  ;;  %1783 = vmatprep.subr.mxu1 %v3244_v0 }
 0x332   :  { %786 = vmatpush1.msra.mxu0 %v2320_v43  ;;  %819 = vmatprep.mubr.f32.mxu0 %v3244_v0 }
 0x333   :  { %1784 = vmatpush3.msra.mxu1 %v3246_v1  ;;  %1785 = vmatprep.mubr.msk.f32.mxu1 %vm2025_vm0, %v3244_v0 }
 0x334   :  { %923 = vmatprep.subr.mxu0 %v3247_v2  ;;  %1788 = vmatprep.subr.mxu1 %v3244_v0  ;;  %v2752_v2 = vld [vmem:[%s3229_s2 + $0x138] sm:$0xff] }
 0x3d3   :  { %v653_v5 = vpop.f32.mrf.mxu0  ;;  %v724_v6 = vpop.f32.mrf.mxu1 }
 0x3d4   :  { %v728_v7 = vadd.f32 %v1447_v4, %v653_v5  ;;  %v742_v3 = vadd.f32 %v2448_v62, %v724_v6  ;;  %v2766_v4 = vld [vmem:[%s3229_s2 + $0x120] sm:$0xff]  ;;  %v2780_v5 = vld [vmem:[%s3229_s2 + $0x108] sm:$0xff]  ;;  %v2794_v6 = vld [vmem:[%s3229_s2 + $0xf0] sm:$0xff] }
 0x3d5   :  { %v1752_v8 = vpop.f32.mrf.mxu1  ;;  %v655_v11 = vpop.f32.mrf.mxu0 }
 0x3d6   :  { %v1450_v9 = vmul.f32 -1.442695, %v728_v7  ;;  %v735_v12 = vadd.f32 %v1448_v10, %v655_v11  ;;  %v2808_v7 = vld [vmem:[%s3229_s2 + $0xd8] sm:$0xff]  ;;  %v2935_v10 = vld [vmem:[%s3229_s2 + $0xe8] sm:$0xff] }
 0x3d7   :  { %v2917_v8 = vld [vmem:[%s3229_s2 + $0x118] sm:$0xff]  ;;  %v2941_v11 = vld [vmem:[%s3229_s2 + $0xc8] sm:$0xff] }
 0x3d8   :  { %1925 = vpow2.f32 %v1450_v9  ;;  %v1451_v13 = vmul.f32 -1.442695, %v735_v12  ;;  %v2926_v9 = vld [vmem:[%s3229_s2 + $0x100] sm:$0xff] }
 0x3d9   :  { %v2948_v12 = vld [vmem:[%s3229_s2 + $0xc0] sm:$0xff] }
 0x3da   :  { %1927 = vpow2.f32 %v1451_v13  ;;  %v2954_v13 = vld [vmem:[%s3229_s2 + $0xd0] sm:$0xff] }
 0x3e5   :  { %v1926_v15 = vpop.eup %1925 }
 0x3e6   :  { %v732_v49 = vadd.f32 1.0, %v1926_v15  ;;  %v2960_v15 = vld [vmem:[%s3229_s2 + $0xb0] sm:$0xff] }
 0x3e7   :  { %v1928_v57 = vpop.eup %1927 }
 0x3e8   :  { %1929 = vrcp.f32 %v732_v49  ;;  %v739_v61 = vadd.f32 1.0, %v1928_v57  ;;  %v2967_v49 = vld [vmem:[%s3229_s2 + $0xa8] sm:$0xff]  ;;  %v2973_v57 = vld [vmem:[%s3229_s2 + $0xb8] sm:$0xff] }
 0x3f5   :  { %v1930_v58 = vpop.eup %1929 }
 0x3f6   :  { %v743_v54 = vmul.f32 %v1930_v58, %v742_v3  ;;  %v2979_v3 = vld [vmem:[%s3229_s2 + $0x98] sm:$0xff]  ;;  %v2986_v58 = vld [vmem:[%s3229_s2 + $0x90] sm:$0xff] }
 0x3f8   :  { %v744_v55 = vadd.f32 %v1449_v53, %v743_v54  ;;  %v2992_v53 = vld [vmem:[%s3229_s2 + $0xa0] sm:$0xff] }
 0x3f9   :  { %v2998_v54 = vld [vmem:[%s3229_s2 + $0x80] sm:$0xff] }
 0x3fa   :  { %1931 = vtanh.f32 %v744_v55  ;;  %v3005_v55 = vld [vmem:[%s3229_s2 + $0x78] sm:$0xff] }
 0x3fb   :  { %1933 = vrcp.f32 %v739_v61  ;;  %v3011_v61 = vld [vmem:[%s3229_s2 + $0x88] sm:$0xff] }
 0x407   :  { %v1932_v63 = vpop.eup %1931 }
 0x408   :  { %v746_v59 = vsub.f32 %v2627_v52, %v1932_v63  ;;  %v1934_v60 = vpop.eup %1933  ;;  %v2738_v52 = vld [vmem:[%s3229_s2 + $0x150] sm:$0xff] }
 0x40a   :  { %v747_v44 = vmul.f32 %v1934_v60, %v746_v59  ;;  %v3024_v59 = vld [vmem:[%s3229_s2 + $0x60] sm:$0xff]  ;;  %v3030_v60 = vld [vmem:[%s3229_s2 + $0x70] sm:$0xff] }
 0x40c   :  { %v2713_v56 = vadd.f32 %v1932_v63, %v747_v44  ;;  %v3017_v63 = vld [vmem:[%s3229_s2 + $0x68] sm:$0xff]  ;;  %v3036_v44 = vld [vmem:[%s3229_s2 + $0x50] sm:$0xff] }
 0x40e   :  { %1452 = vst [vmem:[%s3233_s4 + $0x18] sm:$0xff] %v2713_v56  ;;  %820 = vmatmul.mubr.f32.vlgmr.msra.gmra.mxu0 %v2713_v56  ;;  %1786 = vmatmul.mubr.f32.vlgmr.msra.gmra.mxu1 %v2713_v56 }
 0x40f   :  { %924 = vmatpush1.msra.mxu0 %v2724_v50  ;;  %1789 = vmatpush3.msra.mxu1 %v2138_v14  ;;  %v2745_v14 = vld [vmem:[%s3229_s2 + $0x140] sm:$0xff] }
 0x410   :  { %925 = vmatprep.subr.mxu0 %v2731_v51  ;;  %1790 = vmatprep.subr.mxu1 %v3244_v0 }
 0x411   :  { %926 = vmatpush1.msra.mxu0 %v2738_v52  ;;  %1791 = vmatpush3.msra.mxu1 %v2150_v16  ;;  %v2759_v16 = vld [vmem:[%s3229_s2 + $0x128] sm:$0xff] }
 0x412   :  { %927 = vmatprep.subr.mxu0 %v2745_v14  ;;  %1792 = vmatprep.subr.mxu1 %v3244_v0 }
 0x413   :  { %928 = vmatpush1.msra.mxu0 %v2752_v2  ;;  %1793 = vmatpush3.msra.mxu1 %v2162_v18  ;;  %v2773_v18 = vld [vmem:[%s3229_s2 + $0x110] sm:$0xff] }
 0x414   :  { %929 = vmatprep.subr.mxu0 %v2759_v16  ;;  %1794 = vmatprep.subr.mxu1 %v3244_v0 }
 0x415   :  { %930 = vmatpush1.msra.mxu0 %v2766_v4  ;;  %1795 = vmatpush3.msra.mxu1 %v2181_v21  ;;  %v2787_v21 = vld [vmem:[%s3229_s2 + $0xf8] sm:$0xff] }
 0x416   :  { %931 = vmatprep.subr.mxu0 %v2773_v18  ;;  %1796 = vmatprep.subr.mxu1 %v3244_v0 }
 0x417   :  { %932 = vmatpush1.msra.mxu0 %v2780_v5  ;;  %1797 = vmatpush3.msra.mxu1 %v2200_v24  ;;  %v2801_v24 = vld [vmem:[%s3229_s2 + $0xe0] sm:$0xff] }
 0x418   :  { %933 = vmatprep.subr.mxu0 %v2787_v21  ;;  %1798 = vmatprep.subr.mxu1 %v3244_v0 }
 0x419   :  { %934 = vmatpush1.msra.mxu0 %v2794_v6  ;;  %1799 = vmatpush3.msra.mxu1 %v2219_v27  ;;  %v1454_v27 = vld [vmem:[%s3231_s0 + $0x68] sm:$0xff] }
 0x41a   :  { %935 = vmatprep.subr.mxu0 %v2801_v24  ;;  %1800 = vmatprep.subr.mxu1 %v3244_v0 }
 0x41b   :  { %936 = vmatpush1.msra.mxu0 %v2808_v7  ;;  %1801 = vmatpush3.msra.mxu1 %v2238_v30 }
 0x41c   :  { %937 = vmatprep.subr.mxu0 %v2156_v17  ;;  %1802 = vmatprep.subr.mxu1 %v3244_v0  ;;  %v2854_v17 = vld [vmem:[%s3229_s2 + $0x170] sm:$0xff] }
 0x41d   :  { %938 = vmatpush1.msra.mxu0 %v2168_v19  ;;  %1803 = vmatpush3.msra.mxu1 %v2257_v33  ;;  %v1453_v19 = vld [vmem:[%s3231_s0 + $0x60] sm:$0xff] }
 0x41e   :  { %939 = vmatprep.subr.mxu0 %v2175_v20  ;;  %1804 = vmatprep.subr.mxu1 %v3244_v0 }
 0x41f   :  { %940 = vmatpush1.msra.mxu0 %v2187_v22  ;;  %1805 = vmatpush3.msra.mxu1 %v2276_v36  ;;  %v1455_v36 = vld [vmem:[%s3231_s0 + $0x70] sm:$0xff] }
 0x420   :  { %941 = vmatprep.subr.mxu0 %v2194_v23  ;;  %1806 = vmatprep.subr.mxu1 %v3244_v0 }
 0x421   :  { %942 = vmatpush1.msra.mxu0 %v2206_v25  ;;  %1807 = vmatpush3.msra.mxu1 %v2295_v39 }
 0x422   :  { %943 = vmatprep.subr.mxu0 %v2213_v26  ;;  %1808 = vmatprep.subr.mxu1 %v3244_v0 }
 0x423   :  { %944 = vmatpush1.msra.mxu0 %v2225_v28  ;;  %1809 = vmatpush3.msra.mxu1 %v2314_v42 }
 0x424   :  { %945 = vmatprep.subr.mxu0 %v2232_v29  ;;  %1810 = vmatprep.subr.mxu1 %v3244_v0 }
 0x425   :  { %946 = vmatpush1.msra.mxu0 %v2244_v31  ;;  %1811 = vmatpush3.msra.mxu1 %v2333_v45 }
 0x426   :  { %947 = vmatprep.subr.mxu0 %v2251_v32  ;;  %1812 = vmatprep.subr.mxu1 %v3244_v0 }
 0x427   :  { %948 = vmatpush1.msra.mxu0 %v2263_v34  ;;  %1813 = vmatpush3.msra.mxu1 %v2342_v46  ;;  %v2881_v46 = vld [vmem:[%s3229_s2 + $0x178] sm:$0xff] }
 0x428   :  { %949 = vmatprep.subr.mxu0 %v2270_v35  ;;  %1814 = vmatprep.subr.mxu1 %v3244_v0 }
 0x429   :  { %950 = vmatpush1.msra.mxu0 %v2282_v37  ;;  %1815 = vmatpush3.msra.mxu1 %v2350_v47  ;;  %v2890_v47 = vld [vmem:[%s3229_s2 + $0x160] sm:$0xff] }
 0x42a   :  { %951 = vmatprep.subr.mxu0 %v2289_v38  ;;  %1816 = vmatprep.subr.mxu1 %v3244_v0 }
 0x42b   :  { %952 = vmatpush1.msra.mxu0 %v2301_v40  ;;  %1817 = vmatpush3.msra.mxu1 %v2359_v48  ;;  %v2899_v48 = vld [vmem:[%s3229_s2 + $0x148] sm:$0xff] }
 0x42c   :  { %953 = vmatprep.subr.mxu0 %v2308_v41  ;;  %1818 = vmatprep.subr.mxu1 %v3244_v0 }
 0x42d   :  { %954 = vmatpush1.msra.mxu0 %v2320_v43  ;;  %987 = vmatprep.mubr.f32.mxu0 %v3244_v0 }
 0x42e   :  { %1819 = vmatpush3.msra.mxu1 %v3246_v1  ;;  %1820 = vmatprep.mubr.msk.f32.mxu1 %vm2025_vm0, %v3244_v0  ;;  %v2908_v1 = vld [vmem:[%s3229_s2 + $0x130] sm:$0xff] }
 0x42f   :  { %1091 = vmatprep.subr.mxu0 %v2854_v17  ;;  %1823 = vmatprep.subr.mxu1 %v3244_v0 }
 0x4ce   :  { %v821_v20 = vpop.f32.mrf.mxu0  ;;  %v892_v22 = vpop.f32.mrf.mxu1 }
 0x4cf   :  { %v896_v23 = vadd.f32 %v1453_v19, %v821_v20  ;;  %v910_v34 = vadd.f32 %v2448_v62, %v892_v22  ;;  %v3049_v19 = vld [vmem:[%s3229_s2 + $0x58] sm:$0xff]  ;;  %v3062_v22 = vld [vmem:[%s3229_s2 + $0x30] sm:$0xff] }
 0x4d0   :  { %v1787_v25 = vpop.f32.mrf.mxu1  ;;  %v823_v28 = vpop.f32.mrf.mxu0  ;;  %v3055_v20 = vld [vmem:[%s3229_s2 + $0x38] sm:$0xff] }
 0x4d1   :  { %v1456_v26 = vmul.f32 -1.442695, %v896_v23  ;;  %v903_v29 = vadd.f32 %v1454_v27, %v823_v28  ;;  %v3068_v23 = vld [vmem:[%s3229_s2 + $0x40] sm:$0xff]  ;;  %v3087_v27 = vld [vmem:[%s3229_s2 + $0x28] sm:$0xff] }
 0x4d2   :  { %v3074_v25 = vld [vmem:[%s3229_s2 + $0x20] sm:$0xff]  ;;  %v3093_v28 = vld [vmem:[%s3229_s2 + $0x8] sm:$0xff] }
 0x4d3   :  { %1935 = vpow2.f32 %v1456_v26  ;;  %v1457_v30 = vmul.f32 -1.442695, %v903_v29  ;;  %v3081_v26 = vld [vmem:[%s3229_s2 + $0x18] sm:$0xff]  ;;  %v3100_v29 = vld [vmem:[%s3229_s2] sm:$0xff] }
 0x4d5   :  { %1937 = vpow2.f32 %v1457_v30  ;;  %v3107_v30 = vld [vmem:[%s3229_s2 + $0x10] sm:$0xff] }
 0x4d6   :  { %3248 = vst [vmem:[#allocation3_spill] sm:$0xff] %v3107_v30 }
 0x4e0   :  { %v1936_v31 = vpop.eup %1935 }
 0x4e1   :  { %v900_v32 = vadd.f32 1.0, %v1936_v31  ;;  %v1459_v31 = vld [vmem:[%s3231_s0 + $0x78] sm:$0xff] }
 0x4e2   :  { %v1938_v33 = vpop.eup %1937 }
 0x4e3   :  { %1939 = vrcp.f32 %v900_v32  ;;  %v907_v39 = vadd.f32 1.0, %v1938_v33 }
 0x4f0   :  { %v1940_v35 = vpop.eup %1939 }
 0x4f1   :  { %v911_v37 = vmul.f32 %v1940_v35, %v910_v34 }
 0x4f3   :  { %v912_v38 = vadd.f32 %v1455_v36, %v911_v37  ;;  %v1460_v37 = vld [vmem:[%s3231_s0 + $0x80] sm:$0xff] }
 0x4f5   :  { %1941 = vtanh.f32 %v912_v38 }
 0x4f6   :  { %1943 = vrcp.f32 %v907_v39 }
 0x502   :  { %v1942_v40 = vpop.eup %1941 }
 0x503   :  { %v914_v41 = vsub.f32 %v2713_v56, %v1942_v40  ;;  %v1944_v42 = vpop.eup %1943  ;;  %v3043_v56 = vld [vmem:[%s3229_s2 + $0x48] sm:$0xff] }
 0x505   :  { %v915_v43 = vmul.f32 %v1944_v42, %v914_v41 }
 0x507   :  { %v2869_v45 = vadd.f32 %v1942_v40, %v915_v43 }
 0x509   :  { %1458 = vst [vmem:[%s3233_s4 + $0x20] sm:$0xff] %v2869_v45  ;;  %988 = vmatmul.mubr.f32.vlgmr.msra.gmra.mxu0 %v2869_v45  ;;  %1821 = vmatmul.mubr.f32.vlgmr.msra.gmra.mxu1 %v2869_v45 }
 0x50a   :  { %1092 = vmatpush1.msra.mxu0 %v2724_v50  ;;  %1824 = vmatpush3.msra.mxu1 %v2881_v46 }
 0x50b   :  { %1093 = vmatprep.subr.mxu0 %v2731_v51  ;;  %1825 = vmatprep.subr.mxu1 %v3244_v0 }
 0x50c   :  { %1094 = vmatpush1.msra.mxu0 %v2738_v52  ;;  %1826 = vmatpush3.msra.mxu1 %v2890_v47 }
 0x50d   :  { %1095 = vmatprep.subr.mxu0 %v2745_v14  ;;  %1827 = vmatprep.subr.mxu1 %v3244_v0 }
 0x50e   :  { %1096 = vmatpush1.msra.mxu0 %v2752_v2  ;;  %1828 = vmatpush3.msra.mxu1 %v2899_v48 }
 0x50f   :  { %1097 = vmatprep.subr.mxu0 %v2759_v16  ;;  %1829 = vmatprep.subr.mxu1 %v3244_v0 }
 0x510   :  { %1098 = vmatpush1.msra.mxu0 %v2766_v4  ;;  %1830 = vmatpush3.msra.mxu1 %v2908_v1 }
 0x511   :  { %1099 = vmatprep.subr.mxu0 %v2773_v18  ;;  %1831 = vmatprep.subr.mxu1 %v3244_v0 }
 0x512   :  { %1100 = vmatpush1.msra.mxu0 %v2780_v5  ;;  %1832 = vmatpush3.msra.mxu1 %v2917_v8 }
 0x513   :  { %1101 = vmatprep.subr.mxu0 %v2787_v21  ;;  %1833 = vmatprep.subr.mxu1 %v3244_v0 }
 0x514   :  { %1102 = vmatpush1.msra.mxu0 %v2794_v6  ;;  %1834 = vmatpush3.msra.mxu1 %v2926_v9 }
 0x515   :  { %1103 = vmatprep.subr.mxu0 %v2801_v24  ;;  %1835 = vmatprep.subr.mxu1 %v3244_v0 }
 0x516   :  { %1104 = vmatpush1.msra.mxu0 %v2808_v7  ;;  %1836 = vmatpush3.msra.mxu1 %v2935_v10 }
 0x517   :  { %1105 = vmatprep.subr.mxu0 %v2941_v11  ;;  %1837 = vmatprep.subr.mxu1 %v3244_v0 }
 0x518   :  { %1106 = vmatpush1.msra.mxu0 %v2948_v12  ;;  %1838 = vmatpush3.msra.mxu1 %v2954_v13 }
 0x519   :  { %1107 = vmatprep.subr.mxu0 %v2960_v15  ;;  %1839 = vmatprep.subr.mxu1 %v3244_v0 }
 0x51a   :  { %1108 = vmatpush1.msra.mxu0 %v2967_v49  ;;  %1840 = vmatpush3.msra.mxu1 %v2973_v57 }
 0x51b   :  { %1109 = vmatprep.subr.mxu0 %v2979_v3  ;;  %1841 = vmatprep.subr.mxu1 %v3244_v0 }
 0x51c   :  { %1110 = vmatpush1.msra.mxu0 %v2986_v58  ;;  %1842 = vmatpush3.msra.mxu1 %v2992_v53 }
 0x51d   :  { %1111 = vmatprep.subr.mxu0 %v2998_v54  ;;  %1843 = vmatprep.subr.mxu1 %v3244_v0 }
 0x51e   :  { %1112 = vmatpush1.msra.mxu0 %v3005_v55  ;;  %1844 = vmatpush3.msra.mxu1 %v3011_v61 }
 0x51f   :  { %1113 = vmatprep.subr.mxu0 %v3017_v63  ;;  %1845 = vmatprep.subr.mxu1 %v3244_v0 }
 0x520   :  { %1114 = vmatpush1.msra.mxu0 %v3024_v59  ;;  %1846 = vmatpush3.msra.mxu1 %v3030_v60 }
 0x521   :  { %1115 = vmatprep.subr.mxu0 %v3036_v44  ;;  %1847 = vmatprep.subr.mxu1 %v3244_v0 }
 0x522   :  { %1116 = vmatpush1.msra.mxu0 %v3043_v56  ;;  %1848 = vmatpush3.msra.mxu1 %v3049_v19 }
 0x523   :  { %1117 = vmatprep.subr.mxu0 %v3055_v20  ;;  %1849 = vmatprep.subr.mxu1 %v3244_v0 }
 0x524   :  { %1118 = vmatpush1.msra.mxu0 %v3062_v22  ;;  %1850 = vmatpush3.msra.mxu1 %v3068_v23 }
 0x525   :  { %1119 = vmatprep.subr.mxu0 %v3074_v25  ;;  %1851 = vmatprep.subr.mxu1 %v3244_v0 }
 0x526   :  { %1120 = vmatpush1.msra.mxu0 %v3081_v26  ;;  %1852 = vmatpush3.msra.mxu1 %v3087_v27 }
 0x527   :  { %1121 = vmatprep.subr.mxu0 %v3093_v28  ;;  %1853 = vmatprep.subr.mxu1 %v3244_v0 }
 0x528   :  { %1122 = vmatpush1.msra.mxu0 %v3100_v29  ;;  %1155 = vmatprep.mubr.f32.mxu0 %v3244_v0 }
 0x529   :  { %1854 = vmatpush3.msra.mxu1 %v3107_v30  ;;  %1855 = vmatprep.mubr.msk.f32.mxu1 %vm2025_vm0, %v3244_v0 }
 0x52a   :  { %1259 = vmatprep.subr.mxu0 %v2854_v17  ;;  %1858 = vmatprep.subr.mxu1 %v3244_v0 }
 0x5c9   :  { %v989_v32 = vpop.f32.mrf.mxu0  ;;  %v1060_v33 = vpop.f32.mrf.mxu1 }
 0x5ca   :  { %v1064_v34 = vadd.f32 %v1459_v31, %v989_v32  ;;  %v1078_v43 = vadd.f32 %v2448_v62, %v1060_v33  ;;  %v1461_v31 = vld [vmem:[%s3231_s0 + $0x88] sm:$0xff] }
 0x5cb   :  { %v1822_v35 = vpop.f32.mrf.mxu1  ;;  %v991_v38 = vpop.f32.mrf.mxu0  ;;  %v3249_v62 = vld [vmem:[#allocation3_spill] sm:$0xff] }
 0x5cc   :  { %v1462_v36 = vmul.f32 -1.442695, %v1064_v34  ;;  %v1071_v39 = vadd.f32 %v1460_v37, %v991_v38 }
 0x5ce   :  { %1945 = vpow2.f32 %v1462_v36  ;;  %v1463_v40 = vmul.f32 -1.442695, %v1071_v39 }
 0x5d0   :  { %1947 = vpow2.f32 %v1463_v40 }
 0x5db   :  { %v1946_v17 = vpop.eup %1945 }
 0x5dc   :  { %v1068_v41 = vadd.f32 1.0, %v1946_v17 }
 0x5dd   :  { %v1948_v42 = vpop.eup %1947 }
 0x5de   :  { %1949 = vrcp.f32 %v1068_v41  ;;  %v1075_v35 = vadd.f32 1.0, %v1948_v42 }
 0x5eb   :  { %v1950_v30 = vpop.eup %1949 }
 0x5ec   :  { %v1079_v32 = vmul.f32 %v1950_v30, %v1078_v43 }
 0x5ee   :  { %v1080_v34 = vadd.f32 %v1461_v31, %v1079_v32 }
 0x5f0   :  { %1951 = vtanh.f32 %v1080_v34 }
 0x5f1   :  { %1953 = vrcp.f32 %v1075_v35 }
 0x5fd   :  { %v1952_v36 = vpop.eup %1951 }
 0x5fe   :  { %v1082_v37 = vsub.f32 %v2869_v45, %v1952_v36  ;;  %v1954_v38 = vpop.eup %1953 }
 0x600   :  { %v1083_v39 = vmul.f32 %v1954_v38, %v1082_v37 }
 0x602   :  { %v3125_v40 = vadd.f32 %v1952_v36, %v1083_v39 }
 0x604   :  { %1464 = vst [vmem:[%s3233_s4 + $0x28] sm:$0xff] %v3125_v40  ;;  %1156 = vmatmul.mubr.f32.vlgmr.msra.gmra.mxu0 %v3125_v40  ;;  %1856 = vmatmul.mubr.f32.vlgmr.msra.gmra.mxu1 %v3125_v40 }
 0x605   :  { %1260 = vmatpush1.msra.mxu0 %v2724_v50  ;;  %1859 = vmatpush3.msra.mxu1 %v2881_v46  ;;  %v1465_v50 = vld [vmem:[%s3231_s0 + $0x90] sm:$0xff] }
 0x606   :  { %1261 = vmatprep.subr.mxu0 %v2731_v51  ;;  %1860 = vmatprep.subr.mxu1 %v3244_v0 }
 0x607   :  { %1262 = vmatpush1.msra.mxu0 %v2738_v52  ;;  %1861 = vmatpush3.msra.mxu1 %v2890_v47  ;;  %v1467_v47 = vld [vmem:[%s3231_s0 + $0xa0] sm:$0xff] }
 0x608   :  { %1263 = vmatprep.subr.mxu0 %v2745_v14  ;;  %1862 = vmatprep.subr.mxu1 %v3244_v0 }
 0x609   :  { %1264 = vmatpush1.msra.mxu0 %v2752_v2  ;;  %1863 = vmatpush3.msra.mxu1 %v2899_v48 }
 0x60a   :  { %1265 = vmatprep.subr.mxu0 %v2759_v16  ;;  %1864 = vmatprep.subr.mxu1 %v3244_v0 }
 0x60b   :  { %1266 = vmatpush1.msra.mxu0 %v2766_v4  ;;  %1865 = vmatpush3.msra.mxu1 %v2908_v1  ;;  %v1466_v4 = vld [vmem:[%s3231_s0 + $0x98] sm:$0xff] }
 0x60c   :  { %1267 = vmatprep.subr.mxu0 %v2773_v18  ;;  %1866 = vmatprep.subr.mxu1 %v3244_v0 }
 0x60d   :  { %1268 = vmatpush1.msra.mxu0 %v2780_v5  ;;  %1867 = vmatpush3.msra.mxu1 %v2917_v8 }
 0x60e   :  { %1269 = vmatprep.subr.mxu0 %v2787_v21  ;;  %1868 = vmatprep.subr.mxu1 %v3244_v0 }
 0x60f   :  { %1270 = vmatpush1.msra.mxu0 %v2794_v6  ;;  %1869 = vmatpush3.msra.mxu1 %v2926_v9 }
 0x610   :  { %1271 = vmatprep.subr.mxu0 %v2801_v24  ;;  %1870 = vmatprep.subr.mxu1 %v3244_v0 }
 0x611   :  { %1272 = vmatpush1.msra.mxu0 %v2808_v7  ;;  %1871 = vmatpush3.msra.mxu1 %v2935_v10  ;;  %v2023_v7 = vld [vmem:[%s3232_s3] ss:$0 sm:$0xff] }
 0x612   :  { %1273 = vmatprep.subr.mxu0 %v2941_v11  ;;  %1872 = vmatprep.subr.mxu1 %v3244_v0 }
 0x613   :  { %1274 = vmatpush1.msra.mxu0 %v2948_v12  ;;  %1873 = vmatpush3.msra.mxu1 %v2954_v13 }
 0x614   :  { %1275 = vmatprep.subr.mxu0 %v2960_v15  ;;  %1874 = vmatprep.subr.mxu1 %v3244_v0  ;;  %v1471_v15 = vld [vmem:[%s3231_s0 + $0xa8] sm:$0xff] }
 0x615   :  { %1276 = vmatpush1.msra.mxu0 %v2967_v49  ;;  %1875 = vmatpush3.msra.mxu1 %v2973_v57 }
 0x616   :  { %1277 = vmatprep.subr.mxu0 %v2979_v3  ;;  %1876 = vmatprep.subr.mxu1 %v3244_v0 }
 0x617   :  { %1278 = vmatpush1.msra.mxu0 %v2986_v58  ;;  %1877 = vmatpush3.msra.mxu1 %v2992_v53 }
 0x618   :  { %1279 = vmatprep.subr.mxu0 %v2998_v54  ;;  %1878 = vmatprep.subr.mxu1 %v3244_v0  ;;  %v1472_v54 = vld [vmem:[%s3231_s0 + $0xb0] sm:$0xff] }
 0x619   :  { %1280 = vmatpush1.msra.mxu0 %v3005_v55  ;;  %1879 = vmatpush3.msra.mxu1 %v3011_v61 }
 0x61a   :  { %1281 = vmatprep.subr.mxu0 %v3017_v63  ;;  %1880 = vmatprep.subr.mxu1 %v3244_v0 }
 0x61b   :  { %1282 = vmatpush1.msra.mxu0 %v3024_v59  ;;  %1881 = vmatpush3.msra.mxu1 %v3030_v60 }
 0x61c   :  { %1283 = vmatprep.subr.mxu0 %v3036_v44  ;;  %1882 = vmatprep.subr.mxu1 %v3244_v0 }
 0x61d   :  { %1284 = vmatpush1.msra.mxu0 %v3043_v56  ;;  %1883 = vmatpush3.msra.mxu1 %v3049_v19 }
 0x61e   :  { %1285 = vmatprep.subr.mxu0 %v3055_v20  ;;  %1884 = vmatprep.subr.mxu1 %v3244_v0  ;;  %v1473_v20 = vld [vmem:[%s3231_s0 + $0xb8] sm:$0xff] }
 0x61f   :  { %1286 = vmatpush1.msra.mxu0 %v3062_v22  ;;  %1885 = vmatpush3.msra.mxu1 %v3068_v23 }
 0x620   :  { %1287 = vmatprep.subr.mxu0 %v3074_v25  ;;  %1886 = vmatprep.subr.mxu1 %v3244_v0 }
 0x621   :  { %1288 = vmatpush1.msra.mxu0 %v3081_v26  ;;  %1887 = vmatpush3.msra.mxu1 %v3087_v27 }
 0x622   :  { %1289 = vmatprep.subr.mxu0 %v3093_v28  ;;  %1888 = vmatprep.subr.mxu1 %v3244_v0 }
 0x623   :  { %1290 = vmatpush1.msra.mxu0 %v3100_v29  ;;  %1323 = vmatprep.mubr.f32.mxu0 %v3244_v0 }
 0x624   :  { %1889 = vmatpush3.msra.mxu1 %v3249_v62  ;;  %1890 = vmatprep.mubr.msk.f32.mxu1 %vm2025_vm0, %v3244_v0 }
 0x6c4   :  { %v1157_v51 = vpop.f32.mrf.mxu0  ;;  %v1228_v52 = vpop.f32.mrf.mxu1 }
 0x6c5   :  { %v1232_v14 = vadd.f32 %v1465_v50, %v1157_v51  ;;  %v1246_v45 = vadd.f32 %v2023_v7, %v1228_v52 }
 0x6c6   :  { %v1857_v2 = vpop.f32.mrf.mxu1  ;;  %v1159_v18 = vpop.f32.mrf.mxu0 }
 0x6c7   :  { %v1468_v16 = vmul.f32 -1.442695, %v1232_v14  ;;  %v1239_v5 = vadd.f32 %v1466_v4, %v1159_v18 }
 0x6c9   :  { %1955 = vpow2.f32 %v1468_v16  ;;  %v1469_v21 = vmul.f32 -1.442695, %v1239_v5 }
 0x6cb   :  { %1957 = vpow2.f32 %v1469_v21 }
 0x6d6   :  { %v1956_v6 = vpop.eup %1955 }
 0x6d7   :  { %v1236_v24 = vadd.f32 1.0, %v1956_v6 }
 0x6d8   :  { %v1958_v0 = vpop.eup %1957 }
 0x6d9   :  { %1959 = vrcp.f32 %v1236_v24  ;;  %v1243_v8 = vadd.f32 1.0, %v1958_v0 }
 0x6e6   :  { %v1960_v46 = vpop.eup %1959 }
 0x6e7   :  { %v1247_v48 = vmul.f32 %v1960_v46, %v1246_v45 }
 0x6e9   :  { %v1248_v1 = vadd.f32 %v1467_v47, %v1247_v48 }
 0x6eb   :  { %1961 = vtanh.f32 %v1248_v1 }
 0x6ec   :  { %1963 = vrcp.f32 %v1243_v8 }
 0x6f8   :  { %v1962_v9 = vpop.eup %1961 }
 0x6f9   :  { %v1250_v10 = vsub.f32 %v3125_v40, %v1962_v9  ;;  %v1964_v11 = vpop.eup %1963 }
 0x6fb   :  { %v1251_v12 = vmul.f32 %v1964_v11, %v1250_v10 }
 0x6fd   :  { %v1252_v13 = vadd.f32 %v1962_v9, %v1251_v12 }
 0x6ff   :  { %1470 = vst [vmem:[%s3233_s4 + $0x30] sm:$0xff] %v1252_v13  ;;  %1324 = vmatmul.mubr.f32.vlgmr.msra.gmra.mxu0 %v1252_v13  ;;  %1891 = vmatmul.mubr.f32.vlgmr.msra.gmra.mxu1 %v1252_v13 }
 0x7bf   :  { %v1325_v49 = vpop.f32.mrf.mxu0  ;;  %v1396_v57 = vpop.f32.mrf.mxu1 }
 0x7c0   :  { %v1400_v3 = vadd.f32 %v1471_v15, %v1325_v49  ;;  %v1414_v56 = vadd.f32 %v2023_v7, %v1396_v57 }
 0x7c1   :  { %v1892_v58 = vpop.f32.mrf.mxu1  ;;  %v1327_v55 = vpop.f32.mrf.mxu0 }
 0x7c2   :  { %v1474_v53 = vmul.f32 -1.442695, %v1400_v3  ;;  %v1407_v61 = vadd.f32 %v1472_v54, %v1327_v55 }
 0x7c4   :  { %1965 = vpow2.f32 %v1474_v53  ;;  %v1475_v63 = vmul.f32 -1.442695, %v1407_v61 }
 0x7c6   :  { %1967 = vpow2.f32 %v1475_v63 }
 0x7d1   :  { %v1966_v59 = vpop.eup %1965 }
 0x7d2   :  { %v1404_v60 = vadd.f32 1.0, %v1966_v59 }
 0x7d3   :  { %v1968_v44 = vpop.eup %1967 }
 0x7d4   :  { %1969 = vrcp.f32 %v1404_v60  ;;  %v1411_v25 = vadd.f32 1.0, %v1968_v44 }
 0x7e1   :  { %v1970_v19 = vpop.eup %1969 }
 0x7e2   :  { %v1415_v22 = vmul.f32 %v1970_v19, %v1414_v56 }
 0x7e4   :  { %v1416_v23 = vadd.f32 %v1473_v20, %v1415_v22 }
 0x7e6   :  { %1971 = vtanh.f32 %v1416_v23 }
 0x7e7   :  { %1973 = vrcp.f32 %v1411_v25 }
 0x7f3   :  { %v1972_v26 = vpop.eup %1971 }
 0x7f4   :  { %v1418_v27 = vsub.f32 %v1252_v13, %v1972_v26  ;;  %v1974_v28 = vpop.eup %1973 }
 0x7f6   :  { %v1419_v29 = vmul.f32 %v1974_v28, %v1418_v27 }
 0x7f8   :  { %v1420_v30 = vadd.f32 %v1972_v26, %v1419_v29 }
 0x7fa   :  { %1476 = vst [vmem:[%s3233_s4 + $0x38] sm:$0xff] %v1420_v30  ;;  %1423 = vst [vmem:[%s3234_s5] sm:$0xff] %v1420_v30 }

</bundles_post_ra>
